<compile_context>
chip_gen: v6e
topology: v6e:2x2x1
jax: 0.10.0
libtpu: 0.0.40
codegen_flags: <defaults>
</compile_context>

<pallas_src>
import functools

import jax
import jax.numpy as jnp
import numpy as np
from jax import lax
from jax.experimental import pallas as pl
from jax.experimental.pallas import tpu as pltpu

_LANE = 128
_B_TILE = 16          # bf16 sublane packing -> pad/tile batch to 16
_UNROLL_T_MAX = 16    # fully unroll the time loop up to this length


def _round_up(n, m):
    return ((n + m - 1) // m) * m


# -----------------------------------------------------------------------------
# Fused kernel: all LSTM layers + MLP head, one batch tile per grid step
# -----------------------------------------------------------------------------
def _make_fused_kernel(num_layers, seq_len, batch_tile, hidden, use_fori):
    T, B, H = seq_len, batch_tile, hidden

    def kernel(*refs):
        # refs: x(T,Bt,D), (wih_t, whh_t, bias) * num_layers,
        #       w1t, b1, w2t, b2, w3t_pad, b3_pad, out, [xproj_sc, hseq_sc]
        x_ref = refs[0]
        lstm_refs = refs[1:1 + 3 * num_layers]
        (w1_ref, b1_ref, w2_ref, b2_ref,
         w3_ref, b3_ref) = refs[1 + 3 * num_layers:7 + 3 * num_layers]
        out_ref = refs[7 + 3 * num_layers]
        scratch = refs[8 + 3 * num_layers:]
        xproj_sc = scratch[0] if use_fori else None
        hseq_sc = scratch[1] if (use_fori and num_layers > 1) else None

        def lrelu(v):                            # nn.LeakyReLU default slope
            return jnp.where(v >= 0, v, 0.01 * v)

        # (T, Bt, D) -> (T*Bt, D): leading-dim flatten, layout preserving.
        layer_in = x_ref[...].reshape(T * B, x_ref.shape[-1]).astype(jnp.float32)

        h = None
        for l in range(num_layers):              # layers unrolled at trace time
            wih = lstm_refs[3 * l][...]          # (D_in, 4H) bf16, cols [i|f|o|g]
            whh = lstm_refs[3 * l + 1][...]      # (H, 4H)    bf16, cols [i|f|o|g]
            bias = lstm_refs[3 * l + 2][...]     # (1, 4H)    f32 = b_ih + b_hh

            # Hoisted input projection for ALL timesteps (one tall bf16 matmul,
            # f32 accumulate), bias folded in once instead of per step.
            xproj = jnp.dot(layer_in.astype(jnp.bfloat16), wih,
                            preferred_element_type=jnp.float32) + bias  # (T*B,4H)

            h = jnp.zeros((B, H), jnp.float32)
            c = jnp.zeros((B, H), jnp.float32)
            is_last = (l == num_layers - 1)

            def cell(g, c):
                # Gates reordered to [i|f|o|g]: one sigmoid over the first 3H
                # lanes, one tanh over the last H lanes (all f32).
                s = jax.nn.sigmoid(g[:, :3 * H])
                g_c = jnp.tanh(g[:, 3 * H:])
                c_new = s[:, H:2 * H] * c + s[:, :H] * g_c
                h_new = s[:, 2 * H:3 * H] * jnp.tanh(c_new)
                return h_new, c_new

            if not use_fori:
                # Small static T: fully unrolled, hidden sequence kept in
                # values (no VMEM scratch stores / readback).
                hs = []
                for t in range(T):
                    g = xproj[t * B:(t + 1) * B, :] + jnp.dot(
                        h.astype(jnp.bfloat16), whh,
                        preferred_element_type=jnp.float32)          # (B, 4H)
                    h, c = cell(g, c)
                    if not is_last:
                        hs.append(h)
                if not is_last:
                    layer_in = jnp.concatenate(hs, axis=0)           # (T*B, H)
            else:
                # Large T: bounded live ranges via fori_loop; xproj and the
                # hidden sequence live in VMEM scratch, sliced with pl.ds.
                xproj_sc[...] = xproj

                def step(t, carry):
                    h_t, c_t = carry
                    row = pl.multiple_of(t * B, B)
                    g = xproj_sc[pl.ds(row, B), :] + jnp.dot(
                        h_t.astype(jnp.bfloat16), whh,
                        preferred_element_type=jnp.float32)
                    h_n, c_n = cell(g, c_t)
                    if not is_last:
                        hseq_sc[pl.ds(row, B), :] = h_n
                    return h_n, c_n

                h, c = lax.fori_loop(0, T, step, (h, c), unroll=2)
                if not is_last:
                    layer_in = hseq_sc[...]                          # (T*B, H)

        # Fused MLP head on the final hidden state of the last layer.
        z = lrelu(jnp.dot(h.astype(jnp.bfloat16), w1_ref[...],
                          preferred_element_type=jnp.float32) + b1_ref[...])
        z = lrelu(jnp.dot(z.astype(jnp.bfloat16), w2_ref[...],
                          preferred_element_type=jnp.float32) + b2_ref[...])
        z = jnp.dot(z.astype(jnp.bfloat16), w3_ref[...],
                    preferred_element_type=jnp.float32) + b3_ref[...]
        out_ref[...] = z.astype(out_ref.dtype)   # (Bt, C_pad): lane-dense vst

    return kernel


# -----------------------------------------------------------------------------
# Parameter preparation (done ONCE, outside the jitted forward):
# transpose, fuse biases, reorder gate columns [i|f|g|o] -> [i|f|o|g],
# cast matmul weights to bf16, lane-pad fc3.
# -----------------------------------------------------------------------------
def _reorder_gates(m):
    """Permute last-dim gate blocks from [i|f|g|o] to [i|f|o|g]."""
    H = m.shape[-1] // 4
    return jnp.concatenate(
        [m[..., :2 * H], m[..., 3 * H:], m[..., 2 * H:3 * H]], axis=-1)


def prepare_params(lstm_params, fc_params):
    lstm_kp = []
    for (w_ih, w_hh, b_ih, b_hh) in lstm_params:
        wih_t = _reorder_gates(jnp.asarray(w_ih, jnp.float32).T)     # (D_in, 4H)
        whh_t = _reorder_gates(jnp.asarray(w_hh, jnp.float32).T)     # (H, 4H)
        bias = _reorder_gates(
            (jnp.asarray(b_ih, jnp.float32)
             + jnp.asarray(b_hh, jnp.float32)).reshape(1, -1))       # (1, 4H)
        lstm_kp.append((wih_t.astype(jnp.bfloat16),
                        whh_t.astype(jnp.bfloat16),
                        bias))                                       # bias f32

    w1, b1, w2, b2, w3, b3 = fc_params
    nc = w3.shape[0]
    c_pad = _round_up(nc, _LANE)
    w3t = jnp.zeros((w3.shape[1], c_pad), jnp.float32)
    w3t = w3t.at[:, :nc].set(jnp.asarray(w3, jnp.float32).T)
    b3p = jnp.zeros((1, c_pad), jnp.float32)
    b3p = b3p.at[:, :nc].set(jnp.asarray(b3, jnp.float32))
    fc_kp = (
        jnp.asarray(w1, jnp.float32).T.astype(jnp.bfloat16),
        jnp.asarray(b1, jnp.float32).reshape(1, -1),
        jnp.asarray(w2, jnp.float32).T.astype(jnp.bfloat16),
        jnp.asarray(b2, jnp.float32).reshape(1, -1),
        w3t.astype(jnp.bfloat16), b3p,
    )
    return tuple(lstm_kp), fc_kp


# -----------------------------------------------------------------------------
# Forward wrapper: one pallas_call for the whole model, batch-tiled grid
# -----------------------------------------------------------------------------
@functools.partial(jax.jit, static_argnames=("num_classes",))
def lstm_forward(x, lstm_kparams, fc_kparams, *, num_classes):
    """x: (B, T, input_size)  ->  (B, num_classes)."""
    B, T, D = x.shape
    H = lstm_kparams[0][1].shape[0]          # whh_t: (H, 4H)
    num_layers = len(lstm_kparams)
    c_pad = fc_kparams[4].shape[1]
    b_tile = _B_TILE
    b_pad = _round_up(max(B, 1), b_tile)
    n_btiles = b_pad // b_tile

    xf = x.astype(jnp.float32)
    if b_pad != B:
        xf = jnp.pad(xf, ((0, b_pad - B), (0, 0), (0, 0)))
    # Time-major (T, B_pad, D); negligible at this size.
    # TODO(synk): at scale stream per-T-chunk blocks via an index_map instead.
    x_tbd = jnp.transpose(xf, (1, 0, 2))

    args = [x_tbd]
    for layer in lstm_kparams:
        args.extend(layer)
    args.extend(fc_kparams)

    def full_spec(a):
        nd = a.ndim
        return pl.BlockSpec(a.shape, lambda i, _nd=nd: (0,) * _nd)

    in_specs = [pl.BlockSpec((T, b_tile, D), lambda i: (0, i, 0))]
    in_specs += [full_spec(a) for a in args[1:]]

    use_fori = T > _UNROLL_T_MAX
    scratch_shapes = []
    if use_fori:
        scratch_shapes.append(pltpu.VMEM((T * b_tile, 4 * H), jnp.float32))
        if num_layers > 1:
            scratch_shapes.append(pltpu.VMEM((T * b_tile, H), jnp.float32))

    out = pl.pallas_call(
        _make_fused_kernel(num_layers, T, b_tile, H, use_fori),
        out_shape=jax.ShapeDtypeStruct((b_pad, c_pad), jnp.float32),
        grid=(n_btiles,),
        in_specs=in_specs,
        out_specs=pl.BlockSpec((b_tile, c_pad), lambda i: (i, 0)),
        scratch_shapes=scratch_shapes,
        compiler_params=pltpu.CompilerParams(
            dimension_semantics=("parallel",),     # shards batch tiles on v7x
            vmem_limit_bytes=32 * 1024 * 1024),
    )(*args)
    return out[:B, :num_classes]


# -----------------------------------------------------------------------------
# Deterministic parameter init (PyTorch-style uniform bounds)
# -----------------------------------------------------------------------------
def init_params(key, num_classes, input_size, hidden_size, num_layers):
    def uniform(k, shape, bound):
        return jax.random.uniform(k, shape, jnp.float32, -bound, bound)

    lstm_params = []
    k_lstm = 1.0 / np.sqrt(hidden_size)
    for l in range(num_layers):
        d_in = input_size if l == 0 else hidden_size
        key, k1, k2, k3, k4 = jax.random.split(key, 5)
        lstm_params.append((
            uniform(k1, (4 * hidden_size, d_in), k_lstm),          # W_ih
            uniform(k2, (4 * hidden_size, hidden_size), k_lstm),   # W_hh
            uniform(k3, (4 * hidden_size,), k_lstm),               # b_ih
            uniform(k4, (4 * hidden_size,), k_lstm),               # b_hh
        ))

    fc_params = []
    for fan_in, fan_out in [(hidden_size, 64), (64, 32), (32, num_classes)]:
        key, kw, kb = jax.random.split(key, 3)
        bound = 1.0 / np.sqrt(fan_in)
        fc_params.append(uniform(kw, (fan_out, fan_in), bound))
        fc_params.append(uniform(kb, (fan_out,), bound))

    return key, lstm_params, tuple(fc_params)


# -----------------------------------------------------------------------------
# Pure-JAX f32 reference for validation (PyTorch gate order, untransposed)
# -----------------------------------------------------------------------------
def reference_forward(x, lstm_params, fc_params, num_layers):
    B, T, _ = x.shape
    layer_in = x
    hn = None
    for l in range(num_layers):
        w_ih, w_hh, b_ih, b_hh = lstm_params[l]
        H = w_hh.shape[1]
        h = jnp.zeros((B, H), jnp.float32)
        c = jnp.zeros((B, H), jnp.float32)
        outs = []
        for t in range(T):
            g = layer_in[:, t] @ w_ih.T + b_ih + h @ w_hh.T + b_hh
            i_g = jax.nn.sigmoid(g[:, 0 * H:1 * H])
            f_g = jax.nn.sigmoid(g[:, 1 * H:2 * H])
            g_g = jnp.tanh(g[:, 2 * H:3 * H])
            o_g = jax.nn.sigmoid(g[:, 3 * H:4 * H])
            c = f_g * c + i_g * g_g
            h = o_g * jnp.tanh(c)
            outs.append(h)
        layer_in = jnp.stack(outs, axis=1)
        hn = h
    w1, b1, w2, b2, w3, b3 = fc_params

    def lrelu(v):
        return jnp.where(v >= 0, v, 0.01 * v)

    out = lrelu(hn @ w1.T + b1)
    out = lrelu(out @ w2.T + b2)
    return out @ w3.T + b3


# -----------------------------------------------------------------------------
if __name__ == "__main__":
    num_classes = 3
    input_size = 4
    hidden_size = 32
    num_layers = 2
    batch = 2
    seq = 8

    key = jax.random.PRNGKey(0)
    key, lstm_params, fc_params = init_params(
        key, num_classes, input_size, hidden_size, num_layers)
    key, kx = jax.random.split(key)
    x = jax.random.normal(kx, (batch, seq, input_size), jnp.float32)

    lstm_kp, fc_kp = prepare_params(lstm_params, fc_params)
    out = lstm_forward(x, lstm_kp, fc_kp, num_classes=num_classes)
    out = jax.block_until_ready(out)

    ref = reference_forward(x, lstm_params, fc_params, num_layers)
    # Tolerance loosened vs the pure-f32 variant: matmul operands are bf16
    # (f32 accumulation / gate math), per review recommendation.
    np.testing.assert_allclose(np.asarray(out), np.asarray(ref),
                               rtol=3e-2, atol=3e-2)

    assert out.shape == (batch, num_classes)
    print("KERNEL_OK")
</pallas_src>

<mosaic_0001>
module attributes {stable_mosaic.version = 11 : i64} {
  func.func @kernel(%arg0: i32, %arg1: memref<8x16x4xf32, #tpu.memory_space<vmem>>, %arg2: memref<4x128xbf16, #tpu.memory_space<vmem>>, %arg3: memref<32x128xbf16, #tpu.memory_space<vmem>>, %arg4: memref<1x128xf32, #tpu.memory_space<vmem>>, %arg5: memref<32x128xbf16, #tpu.memory_space<vmem>>, %arg6: memref<32x128xbf16, #tpu.memory_space<vmem>>, %arg7: memref<1x128xf32, #tpu.memory_space<vmem>>, %arg8: memref<32x64xbf16, #tpu.memory_space<vmem>>, %arg9: memref<1x64xf32, #tpu.memory_space<vmem>>, %arg10: memref<64x32xbf16, #tpu.memory_space<vmem>>, %arg11: memref<1x32xf32, #tpu.memory_space<vmem>>, %arg12: memref<32x128xbf16, #tpu.memory_space<vmem>>, %arg13: memref<1x128xf32, #tpu.memory_space<vmem>>, %arg14: memref<16x128xf32, #tpu.memory_space<vmem>>) attributes {dimension_semantics = [#tpu.dimension_semantics<parallel>], iteration_bounds = array<i64: 1>, scalar_prefetch = 0 : i64, scratch_operands = 0 : i64, tpu.core_type = #tpu.core_type<tc>, window_params = [{transform_indices = @transform_0, window_bounds = array<i64: 8, 16, 4>}, {pipeline_mode = #tpu.pipeline_mode<synchronous>, transform_indices = @transform_1, window_bounds = array<i64: 4, 128>}, {pipeline_mode = #tpu.pipeline_mode<synchronous>, transform_indices = @transform_2, window_bounds = array<i64: 32, 128>}, {pipeline_mode = #tpu.pipeline_mode<synchronous>, transform_indices = @transform_3, window_bounds = array<i64: 1, 128>}, {pipeline_mode = #tpu.pipeline_mode<synchronous>, transform_indices = @transform_4, window_bounds = array<i64: 32, 128>}, {pipeline_mode = #tpu.pipeline_mode<synchronous>, transform_indices = @transform_5, window_bounds = array<i64: 32, 128>}, {pipeline_mode = #tpu.pipeline_mode<synchronous>, transform_indices = @transform_6, window_bounds = array<i64: 1, 128>}, {pipeline_mode = #tpu.pipeline_mode<synchronous>, transform_indices = @transform_7, window_bounds = array<i64: 32, 64>}, {pipeline_mode = #tpu.pipeline_mode<synchronous>, transform_indices = @transform_8, window_bounds = array<i64: 1, 64>}, {pipeline_mode = #tpu.pipeline_mode<synchronous>, transform_indices = @transform_9, window_bounds = array<i64: 64, 32>}, {pipeline_mode = #tpu.pipeline_mode<synchronous>, transform_indices = @transform_10, window_bounds = array<i64: 1, 32>}, {pipeline_mode = #tpu.pipeline_mode<synchronous>, transform_indices = @transform_11, window_bounds = array<i64: 32, 128>}, {pipeline_mode = #tpu.pipeline_mode<synchronous>, transform_indices = @transform_12, window_bounds = array<i64: 1, 128>}, {transform_indices = @transform_13, window_bounds = array<i64: 16, 128>}]} {
    %c0 = arith.constant 0 : index
    %c0_0 = arith.constant 0 : index
    %c0_1 = arith.constant 0 : index
    %0 = vector.load %arg1[%c0, %c0_0, %c0_1] : memref<8x16x4xf32, #tpu.memory_space<vmem>>, vector<8x16x4xf32>
    %1 = vector.shape_cast %0 : vector<8x16x4xf32> to vector<128x4xf32>
    %c0_2 = arith.constant 0 : index
    %c0_3 = arith.constant 0 : index
    %2 = vector.load %arg2[%c0_2, %c0_3] : memref<4x128xbf16, #tpu.memory_space<vmem>>, vector<4x128xbf16>
    %c0_4 = arith.constant 0 : index
    %c0_5 = arith.constant 0 : index
    %3 = vector.load %arg3[%c0_4, %c0_5] : memref<32x128xbf16, #tpu.memory_space<vmem>>, vector<32x128xbf16>
    %c0_6 = arith.constant 0 : index
    %c0_7 = arith.constant 0 : index
    %4 = vector.load %arg4[%c0_6, %c0_7] : memref<1x128xf32, #tpu.memory_space<vmem>>, vector<1x128xf32>
    %5 = arith.truncf %1 : vector<128x4xf32> to vector<128x4xbf16>
    %cst = arith.constant dense<0.000000e+00> : vector<128x128xf32>
    %6 = tpu.matmul %5, %2, %cst {dimension_numbers = #tpu.dot_dimension_numbers<[1], [0], [0], [1], [0, 0, 1, 1], [], []>} : vector<128x4xbf16>, vector<4x128xbf16>, vector<128x128xf32> -> vector<128x128xf32>
    %7 = vector.broadcast %4 : vector<1x128xf32> to vector<128x128xf32>
    %8 = arith.addf %6, %7 : vector<128x128xf32>
    %cst_8 = arith.constant 0.000000e+00 : f32
    %9 = vector.broadcast %cst_8 : f32 to vector<16x32xf32>
    %cst_9 = arith.constant 0.000000e+00 : f32
    %10 = vector.broadcast %cst_9 : f32 to vector<16x32xf32>
    %11 = vector.extract_strided_slice %8 {offsets = [0, 0], sizes = [16, 128], strides = [1, 1]} : vector<128x128xf32> to vector<16x128xf32>
    %12 = arith.truncf %9 : vector<16x32xf32> to vector<16x32xbf16>
    %cst_10 = arith.constant dense<0.000000e+00> : vector<16x128xf32>
    %13 = tpu.matmul %12, %3, %cst_10 {dimension_numbers = #tpu.dot_dimension_numbers<[1], [0], [0], [1], [0, 0, 1, 1], [], []>} : vector<16x32xbf16>, vector<32x128xbf16>, vector<16x128xf32> -> vector<16x128xf32>
    %14 = arith.addf %11, %13 : vector<16x128xf32>
    %15 = vector.extract_strided_slice %14 {offsets = [0, 0], sizes = [16, 96], strides = [1, 1]} : vector<16x128xf32> to vector<16x96xf32>
    %16 = arith.negf %15 : vector<16x96xf32>
    %17 = math.exp %16 : vector<16x96xf32>
    %cst_11 = arith.constant 1.000000e+00 : f32
    %18 = vector.broadcast %cst_11 : f32 to vector<16x96xf32>
    %19 = arith.addf %18, %17 : vector<16x96xf32>
    %20 = arith.divf %18, %19 : vector<16x96xf32>
    %21 = vector.extract_strided_slice %14 {offsets = [0, 96], sizes = [16, 32], strides = [1, 1]} : vector<16x128xf32> to vector<16x32xf32>
    %22 = math.tanh %21 : vector<16x32xf32>
    %23 = vector.extract_strided_slice %20 {offsets = [0, 32], sizes = [16, 32], strides = [1, 1]} : vector<16x96xf32> to vector<16x32xf32>
    %24 = arith.mulf %23, %10 : vector<16x32xf32>
    %25 = vector.extract_strided_slice %20 {offsets = [0, 0], sizes = [16, 32], strides = [1, 1]} : vector<16x96xf32> to vector<16x32xf32>
    %26 = arith.mulf %25, %22 : vector<16x32xf32>
    %27 = arith.addf %24, %26 : vector<16x32xf32>
    %28 = vector.extract_strided_slice %20 {offsets = [0, 64], sizes = [16, 32], strides = [1, 1]} : vector<16x96xf32> to vector<16x32xf32>
    %29 = math.tanh %27 : vector<16x32xf32>
    %30 = arith.mulf %28, %29 : vector<16x32xf32>
    %31 = vector.extract_strided_slice %8 {offsets = [16, 0], sizes = [16, 128], strides = [1, 1]} : vector<128x128xf32> to vector<16x128xf32>
    %32 = arith.truncf %30 : vector<16x32xf32> to vector<16x32xbf16>
    %cst_12 = arith.constant dense<0.000000e+00> : vector<16x128xf32>
    %33 = tpu.matmul %32, %3, %cst_12 {dimension_numbers = #tpu.dot_dimension_numbers<[1], [0], [0], [1], [0, 0, 1, 1], [], []>} : vector<16x32xbf16>, vector<32x128xbf16>, vector<16x128xf32> -> vector<16x128xf32>
    %34 = arith.addf %31, %33 : vector<16x128xf32>
    %35 = vector.extract_strided_slice %34 {offsets = [0, 0], sizes = [16, 96], strides = [1, 1]} : vector<16x128xf32> to vector<16x96xf32>
    %36 = arith.negf %35 : vector<16x96xf32>
    %37 = math.exp %36 : vector<16x96xf32>
    %cst_13 = arith.constant 1.000000e+00 : f32
    %38 = vector.broadcast %cst_13 : f32 to vector<16x96xf32>
    %39 = arith.addf %38, %37 : vector<16x96xf32>
    %40 = arith.divf %38, %39 : vector<16x96xf32>
    %41 = vector.extract_strided_slice %34 {offsets = [0, 96], sizes = [16, 32], strides = [1, 1]} : vector<16x128xf32> to vector<16x32xf32>
    %42 = math.tanh %41 : vector<16x32xf32>
    %43 = vector.extract_strided_slice %40 {offsets = [0, 32], sizes = [16, 32], strides = [1, 1]} : vector<16x96xf32> to vector<16x32xf32>
    %44 = arith.mulf %43, %27 : vector<16x32xf32>
    %45 = vector.extract_strided_slice %40 {offsets = [0, 0], sizes = [16, 32], strides = [1, 1]} : vector<16x96xf32> to vector<16x32xf32>
    %46 = arith.mulf %45, %42 : vector<16x32xf32>
    %47 = arith.addf %44, %46 : vector<16x32xf32>
    %48 = vector.extract_strided_slice %40 {offsets = [0, 64], sizes = [16, 32], strides = [1, 1]} : vector<16x96xf32> to vector<16x32xf32>
    %49 = math.tanh %47 : vector<16x32xf32>
    %50 = arith.mulf %48, %49 : vector<16x32xf32>
    %51 = vector.extract_strided_slice %8 {offsets = [32, 0], sizes = [16, 128], strides = [1, 1]} : vector<128x128xf32> to vector<16x128xf32>
    %52 = arith.truncf %50 : vector<16x32xf32> to vector<16x32xbf16>
    %cst_14 = arith.constant dense<0.000000e+00> : vector<16x128xf32>
    %53 = tpu.matmul %52, %3, %cst_14 {dimension_numbers = #tpu.dot_dimension_numbers<[1], [0], [0], [1], [0, 0, 1, 1], [], []>} : vector<16x32xbf16>, vector<32x128xbf16>, vector<16x128xf32> -> vector<16x128xf32>
    %54 = arith.addf %51, %53 : vector<16x128xf32>
    %55 = vector.extract_strided_slice %54 {offsets = [0, 0], sizes = [16, 96], strides = [1, 1]} : vector<16x128xf32> to vector<16x96xf32>
    %56 = arith.negf %55 : vector<16x96xf32>
    %57 = math.exp %56 : vector<16x96xf32>
    %cst_15 = arith.constant 1.000000e+00 : f32
    %58 = vector.broadcast %cst_15 : f32 to vector<16x96xf32>
    %59 = arith.addf %58, %57 : vector<16x96xf32>
    %60 = arith.divf %58, %59 : vector<16x96xf32>
    %61 = vector.extract_strided_slice %54 {offsets = [0, 96], sizes = [16, 32], strides = [1, 1]} : vector<16x128xf32> to vector<16x32xf32>
    %62 = math.tanh %61 : vector<16x32xf32>
    %63 = vector.extract_strided_slice %60 {offsets = [0, 32], sizes = [16, 32], strides = [1, 1]} : vector<16x96xf32> to vector<16x32xf32>
    %64 = arith.mulf %63, %47 : vector<16x32xf32>
    %65 = vector.extract_strided_slice %60 {offsets = [0, 0], sizes = [16, 32], strides = [1, 1]} : vector<16x96xf32> to vector<16x32xf32>
    %66 = arith.mulf %65, %62 : vector<16x32xf32>
    %67 = arith.addf %64, %66 : vector<16x32xf32>
    %68 = vector.extract_strided_slice %60 {offsets = [0, 64], sizes = [16, 32], strides = [1, 1]} : vector<16x96xf32> to vector<16x32xf32>
    %69 = math.tanh %67 : vector<16x32xf32>
    %70 = arith.mulf %68, %69 : vector<16x32xf32>
    %71 = vector.extract_strided_slice %8 {offsets = [48, 0], sizes = [16, 128], strides = [1, 1]} : vector<128x128xf32> to vector<16x128xf32>
    %72 = arith.truncf %70 : vector<16x32xf32> to vector<16x32xbf16>
    %cst_16 = arith.constant dense<0.000000e+00> : vector<16x128xf32>
    %73 = tpu.matmul %72, %3, %cst_16 {dimension_numbers = #tpu.dot_dimension_numbers<[1], [0], [0], [1], [0, 0, 1, 1], [], []>} : vector<16x32xbf16>, vector<32x128xbf16>, vector<16x128xf32> -> vector<16x128xf32>
    %74 = arith.addf %71, %73 : vector<16x128xf32>
    %75 = vector.extract_strided_slice %74 {offsets = [0, 0], sizes = [16, 96], strides = [1, 1]} : vector<16x128xf32> to vector<16x96xf32>
    %76 = arith.negf %75 : vector<16x96xf32>
    %77 = math.exp %76 : vector<16x96xf32>
    %cst_17 = arith.constant 1.000000e+00 : f32
    %78 = vector.broadcast %cst_17 : f32 to vector<16x96xf32>
    %79 = arith.addf %78, %77 : vector<16x96xf32>
    %80 = arith.divf %78, %79 : vector<16x96xf32>
    %81 = vector.extract_strided_slice %74 {offsets = [0, 96], sizes = [16, 32], strides = [1, 1]} : vector<16x128xf32> to vector<16x32xf32>
    %82 = math.tanh %81 : vector<16x32xf32>
    %83 = vector.extract_strided_slice %80 {offsets = [0, 32], sizes = [16, 32], strides = [1, 1]} : vector<16x96xf32> to vector<16x32xf32>
    %84 = arith.mulf %83, %67 : vector<16x32xf32>
    %85 = vector.extract_strided_slice %80 {offsets = [0, 0], sizes = [16, 32], strides = [1, 1]} : vector<16x96xf32> to vector<16x32xf32>
    %86 = arith.mulf %85, %82 : vector<16x32xf32>
    %87 = arith.addf %84, %86 : vector<16x32xf32>
    %88 = vector.extract_strided_slice %80 {offsets = [0, 64], sizes = [16, 32], strides = [1, 1]} : vector<16x96xf32> to vector<16x32xf32>
    %89 = math.tanh %87 : vector<16x32xf32>
    %90 = arith.mulf %88, %89 : vector<16x32xf32>
    %91 = vector.extract_strided_slice %8 {offsets = [64, 0], sizes = [16, 128], strides = [1, 1]} : vector<128x128xf32> to vector<16x128xf32>
    %92 = arith.truncf %90 : vector<16x32xf32> to vector<16x32xbf16>
    %cst_18 = arith.constant dense<0.000000e+00> : vector<16x128xf32>
    %93 = tpu.matmul %92, %3, %cst_18 {dimension_numbers = #tpu.dot_dimension_numbers<[1], [0], [0], [1], [0, 0, 1, 1], [], []>} : vector<16x32xbf16>, vector<32x128xbf16>, vector<16x128xf32> -> vector<16x128xf32>
    %94 = arith.addf %91, %93 : vector<16x128xf32>
    %95 = vector.extract_strided_slice %94 {offsets = [0, 0], sizes = [16, 96], strides = [1, 1]} : vector<16x128xf32> to vector<16x96xf32>
    %96 = arith.negf %95 : vector<16x96xf32>
    %97 = math.exp %96 : vector<16x96xf32>
    %cst_19 = arith.constant 1.000000e+00 : f32
    %98 = vector.broadcast %cst_19 : f32 to vector<16x96xf32>
    %99 = arith.addf %98, %97 : vector<16x96xf32>
    %100 = arith.divf %98, %99 : vector<16x96xf32>
    %101 = vector.extract_strided_slice %94 {offsets = [0, 96], sizes = [16, 32], strides = [1, 1]} : vector<16x128xf32> to vector<16x32xf32>
    %102 = math.tanh %101 : vector<16x32xf32>
    %103 = vector.extract_strided_slice %100 {offsets = [0, 32], sizes = [16, 32], strides = [1, 1]} : vector<16x96xf32> to vector<16x32xf32>
    %104 = arith.mulf %103, %87 : vector<16x32xf32>
    %105 = vector.extract_strided_slice %100 {offsets = [0, 0], sizes = [16, 32], strides = [1, 1]} : vector<16x96xf32> to vector<16x32xf32>
    %106 = arith.mulf %105, %102 : vector<16x32xf32>
    %107 = arith.addf %104, %106 : vector<16x32xf32>
    %108 = vector.extract_strided_slice %100 {offsets = [0, 64], sizes = [16, 32], strides = [1, 1]} : vector<16x96xf32> to vector<16x32xf32>
    %109 = math.tanh %107 : vector<16x32xf32>
    %110 = arith.mulf %108, %109 : vector<16x32xf32>
    %111 = vector.extract_strided_slice %8 {offsets = [80, 0], sizes = [16, 128], strides = [1, 1]} : vector<128x128xf32> to vector<16x128xf32>
    %112 = arith.truncf %110 : vector<16x32xf32> to vector<16x32xbf16>
    %cst_20 = arith.constant dense<0.000000e+00> : vector<16x128xf32>
    %113 = tpu.matmul %112, %3, %cst_20 {dimension_numbers = #tpu.dot_dimension_numbers<[1], [0], [0], [1], [0, 0, 1, 1], [], []>} : vector<16x32xbf16>, vector<32x128xbf16>, vector<16x128xf32> -> vector<16x128xf32>
    %114 = arith.addf %111, %113 : vector<16x128xf32>
    %115 = vector.extract_strided_slice %114 {offsets = [0, 0], sizes = [16, 96], strides = [1, 1]} : vector<16x128xf32> to vector<16x96xf32>
    %116 = arith.negf %115 : vector<16x96xf32>
    %117 = math.exp %116 : vector<16x96xf32>
    %cst_21 = arith.constant 1.000000e+00 : f32
    %118 = vector.broadcast %cst_21 : f32 to vector<16x96xf32>
    %119 = arith.addf %118, %117 : vector<16x96xf32>
    %120 = arith.divf %118, %119 : vector<16x96xf32>
    %121 = vector.extract_strided_slice %114 {offsets = [0, 96], sizes = [16, 32], strides = [1, 1]} : vector<16x128xf32> to vector<16x32xf32>
    %122 = math.tanh %121 : vector<16x32xf32>
    %123 = vector.extract_strided_slice %120 {offsets = [0, 32], sizes = [16, 32], strides = [1, 1]} : vector<16x96xf32> to vector<16x32xf32>
    %124 = arith.mulf %123, %107 : vector<16x32xf32>
    %125 = vector.extract_strided_slice %120 {offsets = [0, 0], sizes = [16, 32], strides = [1, 1]} : vector<16x96xf32> to vector<16x32xf32>
    %126 = arith.mulf %125, %122 : vector<16x32xf32>
    %127 = arith.addf %124, %126 : vector<16x32xf32>
    %128 = vector.extract_strided_slice %120 {offsets = [0, 64], sizes = [16, 32], strides = [1, 1]} : vector<16x96xf32> to vector<16x32xf32>
    %129 = math.tanh %127 : vector<16x32xf32>
    %130 = arith.mulf %128, %129 : vector<16x32xf32>
    %131 = vector.extract_strided_slice %8 {offsets = [96, 0], sizes = [16, 128], strides = [1, 1]} : vector<128x128xf32> to vector<16x128xf32>
    %132 = arith.truncf %130 : vector<16x32xf32> to vector<16x32xbf16>
    %cst_22 = arith.constant dense<0.000000e+00> : vector<16x128xf32>
    %133 = tpu.matmul %132, %3, %cst_22 {dimension_numbers = #tpu.dot_dimension_numbers<[1], [0], [0], [1], [0, 0, 1, 1], [], []>} : vector<16x32xbf16>, vector<32x128xbf16>, vector<16x128xf32> -> vector<16x128xf32>
    %134 = arith.addf %131, %133 : vector<16x128xf32>
    %135 = vector.extract_strided_slice %134 {offsets = [0, 0], sizes = [16, 96], strides = [1, 1]} : vector<16x128xf32> to vector<16x96xf32>
    %136 = arith.negf %135 : vector<16x96xf32>
    %137 = math.exp %136 : vector<16x96xf32>
    %cst_23 = arith.constant 1.000000e+00 : f32
    %138 = vector.broadcast %cst_23 : f32 to vector<16x96xf32>
    %139 = arith.addf %138, %137 : vector<16x96xf32>
    %140 = arith.divf %138, %139 : vector<16x96xf32>
    %141 = vector.extract_strided_slice %134 {offsets = [0, 96], sizes = [16, 32], strides = [1, 1]} : vector<16x128xf32> to vector<16x32xf32>
    %142 = math.tanh %141 : vector<16x32xf32>
    %143 = vector.extract_strided_slice %140 {offsets = [0, 32], sizes = [16, 32], strides = [1, 1]} : vector<16x96xf32> to vector<16x32xf32>
    %144 = arith.mulf %143, %127 : vector<16x32xf32>
    %145 = vector.extract_strided_slice %140 {offsets = [0, 0], sizes = [16, 32], strides = [1, 1]} : vector<16x96xf32> to vector<16x32xf32>
    %146 = arith.mulf %145, %142 : vector<16x32xf32>
    %147 = arith.addf %144, %146 : vector<16x32xf32>
    %148 = vector.extract_strided_slice %140 {offsets = [0, 64], sizes = [16, 32], strides = [1, 1]} : vector<16x96xf32> to vector<16x32xf32>
    %149 = math.tanh %147 : vector<16x32xf32>
    %150 = arith.mulf %148, %149 : vector<16x32xf32>
    %151 = vector.extract_strided_slice %8 {offsets = [112, 0], sizes = [16, 128], strides = [1, 1]} : vector<128x128xf32> to vector<16x128xf32>
    %152 = arith.truncf %150 : vector<16x32xf32> to vector<16x32xbf16>
    %cst_24 = arith.constant dense<0.000000e+00> : vector<16x128xf32>
    %153 = tpu.matmul %152, %3, %cst_24 {dimension_numbers = #tpu.dot_dimension_numbers<[1], [0], [0], [1], [0, 0, 1, 1], [], []>} : vector<16x32xbf16>, vector<32x128xbf16>, vector<16x128xf32> -> vector<16x128xf32>
    %154 = arith.addf %151, %153 : vector<16x128xf32>
    %155 = vector.extract_strided_slice %154 {offsets = [0, 0], sizes = [16, 96], strides = [1, 1]} : vector<16x128xf32> to vector<16x96xf32>
    %156 = arith.negf %155 : vector<16x96xf32>
    %157 = math.exp %156 : vector<16x96xf32>
    %cst_25 = arith.constant 1.000000e+00 : f32
    %158 = vector.broadcast %cst_25 : f32 to vector<16x96xf32>
    %159 = arith.addf %158, %157 : vector<16x96xf32>
    %160 = arith.divf %158, %159 : vector<16x96xf32>
    %161 = vector.extract_strided_slice %154 {offsets = [0, 96], sizes = [16, 32], strides = [1, 1]} : vector<16x128xf32> to vector<16x32xf32>
    %162 = math.tanh %161 : vector<16x32xf32>
    %163 = vector.extract_strided_slice %160 {offsets = [0, 32], sizes = [16, 32], strides = [1, 1]} : vector<16x96xf32> to vector<16x32xf32>
    %164 = arith.mulf %163, %147 : vector<16x32xf32>
    %165 = vector.extract_strided_slice %160 {offsets = [0, 0], sizes = [16, 32], strides = [1, 1]} : vector<16x96xf32> to vector<16x32xf32>
    %166 = arith.mulf %165, %162 : vector<16x32xf32>
    %167 = arith.addf %164, %166 : vector<16x32xf32>
    %168 = vector.extract_strided_slice %160 {offsets = [0, 64], sizes = [16, 32], strides = [1, 1]} : vector<16x96xf32> to vector<16x32xf32>
    %169 = math.tanh %167 : vector<16x32xf32>
    %170 = arith.mulf %168, %169 : vector<16x32xf32>
    %171 = tpu.concatenate %30, %50, %70, %90, %110, %130, %150, %170 in 0 : vector<16x32xf32>, vector<16x32xf32>, vector<16x32xf32>, vector<16x32xf32>, vector<16x32xf32>, vector<16x32xf32>, vector<16x32xf32>, vector<16x32xf32> -> vector<128x32xf32>
    %c0_26 = arith.constant 0 : index
    %c0_27 = arith.constant 0 : index
    %172 = vector.load %arg5[%c0_26, %c0_27] : memref<32x128xbf16, #tpu.memory_space<vmem>>, vector<32x128xbf16>
    %c0_28 = arith.constant 0 : index
    %c0_29 = arith.constant 0 : index
    %173 = vector.load %arg6[%c0_28, %c0_29] : memref<32x128xbf16, #tpu.memory_space<vmem>>, vector<32x128xbf16>
    %c0_30 = arith.constant 0 : index
    %c0_31 = arith.constant 0 : index
    %174 = vector.load %arg7[%c0_30, %c0_31] : memref<1x128xf32, #tpu.memory_space<vmem>>, vector<1x128xf32>
    %175 = arith.truncf %171 : vector<128x32xf32> to vector<128x32xbf16>
    %cst_32 = arith.constant dense<0.000000e+00> : vector<128x128xf32>
    %176 = tpu.matmul %175, %172, %cst_32 {dimension_numbers = #tpu.dot_dimension_numbers<[1], [0], [0], [1], [0, 0, 1, 1], [], []>} : vector<128x32xbf16>, vector<32x128xbf16>, vector<128x128xf32> -> vector<128x128xf32>
    %177 = vector.broadcast %174 : vector<1x128xf32> to vector<128x128xf32>
    %178 = arith.addf %176, %177 : vector<128x128xf32>
    %cst_33 = arith.constant 0.000000e+00 : f32
    %179 = vector.broadcast %cst_33 : f32 to vector<16x32xf32>
    %cst_34 = arith.constant 0.000000e+00 : f32
    %180 = vector.broadcast %cst_34 : f32 to vector<16x32xf32>
    %181 = vector.extract_strided_slice %178 {offsets = [0, 0], sizes = [16, 128], strides = [1, 1]} : vector<128x128xf32> to vector<16x128xf32>
    %182 = arith.truncf %179 : vector<16x32xf32> to vector<16x32xbf16>
    %cst_35 = arith.constant dense<0.000000e+00> : vector<16x128xf32>
    %183 = tpu.matmul %182, %173, %cst_35 {dimension_numbers = #tpu.dot_dimension_numbers<[1], [0], [0], [1], [0, 0, 1, 1], [], []>} : vector<16x32xbf16>, vector<32x128xbf16>, vector<16x128xf32> -> vector<16x128xf32>
    %184 = arith.addf %181, %183 : vector<16x128xf32>
    %185 = vector.extract_strided_slice %184 {offsets = [0, 0], sizes = [16, 96], strides = [1, 1]} : vector<16x128xf32> to vector<16x96xf32>
    %186 = arith.negf %185 : vector<16x96xf32>
    %187 = math.exp %186 : vector<16x96xf32>
    %cst_36 = arith.constant 1.000000e+00 : f32
    %188 = vector.broadcast %cst_36 : f32 to vector<16x96xf32>
    %189 = arith.addf %188, %187 : vector<16x96xf32>
    %190 = arith.divf %188, %189 : vector<16x96xf32>
    %191 = vector.extract_strided_slice %184 {offsets = [0, 96], sizes = [16, 32], strides = [1, 1]} : vector<16x128xf32> to vector<16x32xf32>
    %192 = math.tanh %191 : vector<16x32xf32>
    %193 = vector.extract_strided_slice %190 {offsets = [0, 32], sizes = [16, 32], strides = [1, 1]} : vector<16x96xf32> to vector<16x32xf32>
    %194 = arith.mulf %193, %180 : vector<16x32xf32>
    %195 = vector.extract_strided_slice %190 {offsets = [0, 0], sizes = [16, 32], strides = [1, 1]} : vector<16x96xf32> to vector<16x32xf32>
    %196 = arith.mulf %195, %192 : vector<16x32xf32>
    %197 = arith.addf %194, %196 : vector<16x32xf32>
    %198 = vector.extract_strided_slice %190 {offsets = [0, 64], sizes = [16, 32], strides = [1, 1]} : vector<16x96xf32> to vector<16x32xf32>
    %199 = math.tanh %197 : vector<16x32xf32>
    %200 = arith.mulf %198, %199 : vector<16x32xf32>
    %201 = vector.extract_strided_slice %178 {offsets = [16, 0], sizes = [16, 128], strides = [1, 1]} : vector<128x128xf32> to vector<16x128xf32>
    %202 = arith.truncf %200 : vector<16x32xf32> to vector<16x32xbf16>
    %cst_37 = arith.constant dense<0.000000e+00> : vector<16x128xf32>
    %203 = tpu.matmul %202, %173, %cst_37 {dimension_numbers = #tpu.dot_dimension_numbers<[1], [0], [0], [1], [0, 0, 1, 1], [], []>} : vector<16x32xbf16>, vector<32x128xbf16>, vector<16x128xf32> -> vector<16x128xf32>
    %204 = arith.addf %201, %203 : vector<16x128xf32>
    %205 = vector.extract_strided_slice %204 {offsets = [0, 0], sizes = [16, 96], strides = [1, 1]} : vector<16x128xf32> to vector<16x96xf32>
    %206 = arith.negf %205 : vector<16x96xf32>
    %207 = math.exp %206 : vector<16x96xf32>
    %cst_38 = arith.constant 1.000000e+00 : f32
    %208 = vector.broadcast %cst_38 : f32 to vector<16x96xf32>
    %209 = arith.addf %208, %207 : vector<16x96xf32>
    %210 = arith.divf %208, %209 : vector<16x96xf32>
    %211 = vector.extract_strided_slice %204 {offsets = [0, 96], sizes = [16, 32], strides = [1, 1]} : vector<16x128xf32> to vector<16x32xf32>
    %212 = math.tanh %211 : vector<16x32xf32>
    %213 = vector.extract_strided_slice %210 {offsets = [0, 32], sizes = [16, 32], strides = [1, 1]} : vector<16x96xf32> to vector<16x32xf32>
    %214 = arith.mulf %213, %197 : vector<16x32xf32>
    %215 = vector.extract_strided_slice %210 {offsets = [0, 0], sizes = [16, 32], strides = [1, 1]} : vector<16x96xf32> to vector<16x32xf32>
    %216 = arith.mulf %215, %212 : vector<16x32xf32>
    %217 = arith.addf %214, %216 : vector<16x32xf32>
    %218 = vector.extract_strided_slice %210 {offsets = [0, 64], sizes = [16, 32], strides = [1, 1]} : vector<16x96xf32> to vector<16x32xf32>
    %219 = math.tanh %217 : vector<16x32xf32>
    %220 = arith.mulf %218, %219 : vector<16x32xf32>
    %221 = vector.extract_strided_slice %178 {offsets = [32, 0], sizes = [16, 128], strides = [1, 1]} : vector<128x128xf32> to vector<16x128xf32>
    %222 = arith.truncf %220 : vector<16x32xf32> to vector<16x32xbf16>
    %cst_39 = arith.constant dense<0.000000e+00> : vector<16x128xf32>
    %223 = tpu.matmul %222, %173, %cst_39 {dimension_numbers = #tpu.dot_dimension_numbers<[1], [0], [0], [1], [0, 0, 1, 1], [], []>} : vector<16x32xbf16>, vector<32x128xbf16>, vector<16x128xf32> -> vector<16x128xf32>
    %224 = arith.addf %221, %223 : vector<16x128xf32>
    %225 = vector.extract_strided_slice %224 {offsets = [0, 0], sizes = [16, 96], strides = [1, 1]} : vector<16x128xf32> to vector<16x96xf32>
    %226 = arith.negf %225 : vector<16x96xf32>
    %227 = math.exp %226 : vector<16x96xf32>
    %cst_40 = arith.constant 1.000000e+00 : f32
    %228 = vector.broadcast %cst_40 : f32 to vector<16x96xf32>
    %229 = arith.addf %228, %227 : vector<16x96xf32>
    %230 = arith.divf %228, %229 : vector<16x96xf32>
    %231 = vector.extract_strided_slice %224 {offsets = [0, 96], sizes = [16, 32], strides = [1, 1]} : vector<16x128xf32> to vector<16x32xf32>
    %232 = math.tanh %231 : vector<16x32xf32>
    %233 = vector.extract_strided_slice %230 {offsets = [0, 32], sizes = [16, 32], strides = [1, 1]} : vector<16x96xf32> to vector<16x32xf32>
    %234 = arith.mulf %233, %217 : vector<16x32xf32>
    %235 = vector.extract_strided_slice %230 {offsets = [0, 0], sizes = [16, 32], strides = [1, 1]} : vector<16x96xf32> to vector<16x32xf32>
    %236 = arith.mulf %235, %232 : vector<16x32xf32>
    %237 = arith.addf %234, %236 : vector<16x32xf32>
    %238 = vector.extract_strided_slice %230 {offsets = [0, 64], sizes = [16, 32], strides = [1, 1]} : vector<16x96xf32> to vector<16x32xf32>
    %239 = math.tanh %237 : vector<16x32xf32>
    %240 = arith.mulf %238, %239 : vector<16x32xf32>
    %241 = vector.extract_strided_slice %178 {offsets = [48, 0], sizes = [16, 128], strides = [1, 1]} : vector<128x128xf32> to vector<16x128xf32>
    %242 = arith.truncf %240 : vector<16x32xf32> to vector<16x32xbf16>
    %cst_41 = arith.constant dense<0.000000e+00> : vector<16x128xf32>
    %243 = tpu.matmul %242, %173, %cst_41 {dimension_numbers = #tpu.dot_dimension_numbers<[1], [0], [0], [1], [0, 0, 1, 1], [], []>} : vector<16x32xbf16>, vector<32x128xbf16>, vector<16x128xf32> -> vector<16x128xf32>
    %244 = arith.addf %241, %243 : vector<16x128xf32>
    %245 = vector.extract_strided_slice %244 {offsets = [0, 0], sizes = [16, 96], strides = [1, 1]} : vector<16x128xf32> to vector<16x96xf32>
    %246 = arith.negf %245 : vector<16x96xf32>
    %247 = math.exp %246 : vector<16x96xf32>
    %cst_42 = arith.constant 1.000000e+00 : f32
    %248 = vector.broadcast %cst_42 : f32 to vector<16x96xf32>
    %249 = arith.addf %248, %247 : vector<16x96xf32>
    %250 = arith.divf %248, %249 : vector<16x96xf32>
    %251 = vector.extract_strided_slice %244 {offsets = [0, 96], sizes = [16, 32], strides = [1, 1]} : vector<16x128xf32> to vector<16x32xf32>
    %252 = math.tanh %251 : vector<16x32xf32>
    %253 = vector.extract_strided_slice %250 {offsets = [0, 32], sizes = [16, 32], strides = [1, 1]} : vector<16x96xf32> to vector<16x32xf32>
    %254 = arith.mulf %253, %237 : vector<16x32xf32>
    %255 = vector.extract_strided_slice %250 {offsets = [0, 0], sizes = [16, 32], strides = [1, 1]} : vector<16x96xf32> to vector<16x32xf32>
    %256 = arith.mulf %255, %252 : vector<16x32xf32>
    %257 = arith.addf %254, %256 : vector<16x32xf32>
    %258 = vector.extract_strided_slice %250 {offsets = [0, 64], sizes = [16, 32], strides = [1, 1]} : vector<16x96xf32> to vector<16x32xf32>
    %259 = math.tanh %257 : vector<16x32xf32>
    %260 = arith.mulf %258, %259 : vector<16x32xf32>
    %261 = vector.extract_strided_slice %178 {offsets = [64, 0], sizes = [16, 128], strides = [1, 1]} : vector<128x128xf32> to vector<16x128xf32>
    %262 = arith.truncf %260 : vector<16x32xf32> to vector<16x32xbf16>
    %cst_43 = arith.constant dense<0.000000e+00> : vector<16x128xf32>
    %263 = tpu.matmul %262, %173, %cst_43 {dimension_numbers = #tpu.dot_dimension_numbers<[1], [0], [0], [1], [0, 0, 1, 1], [], []>} : vector<16x32xbf16>, vector<32x128xbf16>, vector<16x128xf32> -> vector<16x128xf32>
    %264 = arith.addf %261, %263 : vector<16x128xf32>
    %265 = vector.extract_strided_slice %264 {offsets = [0, 0], sizes = [16, 96], strides = [1, 1]} : vector<16x128xf32> to vector<16x96xf32>
    %266 = arith.negf %265 : vector<16x96xf32>
    %267 = math.exp %266 : vector<16x96xf32>
    %cst_44 = arith.constant 1.000000e+00 : f32
    %268 = vector.broadcast %cst_44 : f32 to vector<16x96xf32>
    %269 = arith.addf %268, %267 : vector<16x96xf32>
    %270 = arith.divf %268, %269 : vector<16x96xf32>
    %271 = vector.extract_strided_slice %264 {offsets = [0, 96], sizes = [16, 32], strides = [1, 1]} : vector<16x128xf32> to vector<16x32xf32>
    %272 = math.tanh %271 : vector<16x32xf32>
    %273 = vector.extract_strided_slice %270 {offsets = [0, 32], sizes = [16, 32], strides = [1, 1]} : vector<16x96xf32> to vector<16x32xf32>
    %274 = arith.mulf %273, %257 : vector<16x32xf32>
    %275 = vector.extract_strided_slice %270 {offsets = [0, 0], sizes = [16, 32], strides = [1, 1]} : vector<16x96xf32> to vector<16x32xf32>
    %276 = arith.mulf %275, %272 : vector<16x32xf32>
    %277 = arith.addf %274, %276 : vector<16x32xf32>
    %278 = vector.extract_strided_slice %270 {offsets = [0, 64], sizes = [16, 32], strides = [1, 1]} : vector<16x96xf32> to vector<16x32xf32>
    %279 = math.tanh %277 : vector<16x32xf32>
    %280 = arith.mulf %278, %279 : vector<16x32xf32>
    %281 = vector.extract_strided_slice %178 {offsets = [80, 0], sizes = [16, 128], strides = [1, 1]} : vector<128x128xf32> to vector<16x128xf32>
    %282 = arith.truncf %280 : vector<16x32xf32> to vector<16x32xbf16>
    %cst_45 = arith.constant dense<0.000000e+00> : vector<16x128xf32>
    %283 = tpu.matmul %282, %173, %cst_45 {dimension_numbers = #tpu.dot_dimension_numbers<[1], [0], [0], [1], [0, 0, 1, 1], [], []>} : vector<16x32xbf16>, vector<32x128xbf16>, vector<16x128xf32> -> vector<16x128xf32>
    %284 = arith.addf %281, %283 : vector<16x128xf32>
    %285 = vector.extract_strided_slice %284 {offsets = [0, 0], sizes = [16, 96], strides = [1, 1]} : vector<16x128xf32> to vector<16x96xf32>
    %286 = arith.negf %285 : vector<16x96xf32>
    %287 = math.exp %286 : vector<16x96xf32>
    %cst_46 = arith.constant 1.000000e+00 : f32
    %288 = vector.broadcast %cst_46 : f32 to vector<16x96xf32>
    %289 = arith.addf %288, %287 : vector<16x96xf32>
    %290 = arith.divf %288, %289 : vector<16x96xf32>
    %291 = vector.extract_strided_slice %284 {offsets = [0, 96], sizes = [16, 32], strides = [1, 1]} : vector<16x128xf32> to vector<16x32xf32>
    %292 = math.tanh %291 : vector<16x32xf32>
    %293 = vector.extract_strided_slice %290 {offsets = [0, 32], sizes = [16, 32], strides = [1, 1]} : vector<16x96xf32> to vector<16x32xf32>
    %294 = arith.mulf %293, %277 : vector<16x32xf32>
    %295 = vector.extract_strided_slice %290 {offsets = [0, 0], sizes = [16, 32], strides = [1, 1]} : vector<16x96xf32> to vector<16x32xf32>
    %296 = arith.mulf %295, %292 : vector<16x32xf32>
    %297 = arith.addf %294, %296 : vector<16x32xf32>
    %298 = vector.extract_strided_slice %290 {offsets = [0, 64], sizes = [16, 32], strides = [1, 1]} : vector<16x96xf32> to vector<16x32xf32>
    %299 = math.tanh %297 : vector<16x32xf32>
    %300 = arith.mulf %298, %299 : vector<16x32xf32>
    %301 = vector.extract_strided_slice %178 {offsets = [96, 0], sizes = [16, 128], strides = [1, 1]} : vector<128x128xf32> to vector<16x128xf32>
    %302 = arith.truncf %300 : vector<16x32xf32> to vector<16x32xbf16>
    %cst_47 = arith.constant dense<0.000000e+00> : vector<16x128xf32>
    %303 = tpu.matmul %302, %173, %cst_47 {dimension_numbers = #tpu.dot_dimension_numbers<[1], [0], [0], [1], [0, 0, 1, 1], [], []>} : vector<16x32xbf16>, vector<32x128xbf16>, vector<16x128xf32> -> vector<16x128xf32>
    %304 = arith.addf %301, %303 : vector<16x128xf32>
    %305 = vector.extract_strided_slice %304 {offsets = [0, 0], sizes = [16, 96], strides = [1, 1]} : vector<16x128xf32> to vector<16x96xf32>
    %306 = arith.negf %305 : vector<16x96xf32>
    %307 = math.exp %306 : vector<16x96xf32>
    %cst_48 = arith.constant 1.000000e+00 : f32
    %308 = vector.broadcast %cst_48 : f32 to vector<16x96xf32>
    %309 = arith.addf %308, %307 : vector<16x96xf32>
    %310 = arith.divf %308, %309 : vector<16x96xf32>
    %311 = vector.extract_strided_slice %304 {offsets = [0, 96], sizes = [16, 32], strides = [1, 1]} : vector<16x128xf32> to vector<16x32xf32>
    %312 = math.tanh %311 : vector<16x32xf32>
    %313 = vector.extract_strided_slice %310 {offsets = [0, 32], sizes = [16, 32], strides = [1, 1]} : vector<16x96xf32> to vector<16x32xf32>
    %314 = arith.mulf %313, %297 : vector<16x32xf32>
    %315 = vector.extract_strided_slice %310 {offsets = [0, 0], sizes = [16, 32], strides = [1, 1]} : vector<16x96xf32> to vector<16x32xf32>
    %316 = arith.mulf %315, %312 : vector<16x32xf32>
    %317 = arith.addf %314, %316 : vector<16x32xf32>
    %318 = vector.extract_strided_slice %310 {offsets = [0, 64], sizes = [16, 32], strides = [1, 1]} : vector<16x96xf32> to vector<16x32xf32>
    %319 = math.tanh %317 : vector<16x32xf32>
    %320 = arith.mulf %318, %319 : vector<16x32xf32>
    %321 = vector.extract_strided_slice %178 {offsets = [112, 0], sizes = [16, 128], strides = [1, 1]} : vector<128x128xf32> to vector<16x128xf32>
    %322 = arith.truncf %320 : vector<16x32xf32> to vector<16x32xbf16>
    %cst_49 = arith.constant dense<0.000000e+00> : vector<16x128xf32>
    %323 = tpu.matmul %322, %173, %cst_49 {dimension_numbers = #tpu.dot_dimension_numbers<[1], [0], [0], [1], [0, 0, 1, 1], [], []>} : vector<16x32xbf16>, vector<32x128xbf16>, vector<16x128xf32> -> vector<16x128xf32>
    %324 = arith.addf %321, %323 : vector<16x128xf32>
    %325 = vector.extract_strided_slice %324 {offsets = [0, 0], sizes = [16, 96], strides = [1, 1]} : vector<16x128xf32> to vector<16x96xf32>
    %326 = arith.negf %325 : vector<16x96xf32>
    %327 = math.exp %326 : vector<16x96xf32>
    %cst_50 = arith.constant 1.000000e+00 : f32
    %328 = vector.broadcast %cst_50 : f32 to vector<16x96xf32>
    %329 = arith.addf %328, %327 : vector<16x96xf32>
    %330 = arith.divf %328, %329 : vector<16x96xf32>
    %331 = vector.extract_strided_slice %324 {offsets = [0, 96], sizes = [16, 32], strides = [1, 1]} : vector<16x128xf32> to vector<16x32xf32>
    %332 = math.tanh %331 : vector<16x32xf32>
    %333 = vector.extract_strided_slice %330 {offsets = [0, 32], sizes = [16, 32], strides = [1, 1]} : vector<16x96xf32> to vector<16x32xf32>
    %334 = arith.mulf %333, %317 : vector<16x32xf32>
    %335 = vector.extract_strided_slice %330 {offsets = [0, 0], sizes = [16, 32], strides = [1, 1]} : vector<16x96xf32> to vector<16x32xf32>
    %336 = arith.mulf %335, %332 : vector<16x32xf32>
    %337 = arith.addf %334, %336 : vector<16x32xf32>
    %338 = vector.extract_strided_slice %330 {offsets = [0, 64], sizes = [16, 32], strides = [1, 1]} : vector<16x96xf32> to vector<16x32xf32>
    %339 = math.tanh %337 : vector<16x32xf32>
    %340 = arith.mulf %338, %339 : vector<16x32xf32>
    %341 = arith.truncf %340 : vector<16x32xf32> to vector<16x32xbf16>
    %c0_51 = arith.constant 0 : index
    %c0_52 = arith.constant 0 : index
    %342 = vector.load %arg8[%c0_51, %c0_52] : memref<32x64xbf16, #tpu.memory_space<vmem>>, vector<32x64xbf16>
    %cst_53 = arith.constant dense<0.000000e+00> : vector<16x64xf32>
    %343 = tpu.matmul %341, %342, %cst_53 {dimension_numbers = #tpu.dot_dimension_numbers<[1], [0], [0], [1], [0, 0, 1, 1], [], []>} : vector<16x32xbf16>, vector<32x64xbf16>, vector<16x64xf32> -> vector<16x64xf32>
    %c0_54 = arith.constant 0 : index
    %c0_55 = arith.constant 0 : index
    %344 = vector.load %arg9[%c0_54, %c0_55] : memref<1x64xf32, #tpu.memory_space<vmem>>, vector<1x64xf32>
    %345 = vector.broadcast %344 : vector<1x64xf32> to vector<16x64xf32>
    %346 = arith.addf %343, %345 : vector<16x64xf32>
    %cst_56 = arith.constant 0.000000e+00 : f32
    %347 = vector.broadcast %cst_56 : f32 to vector<16x64xf32>
    %348 = arith.cmpf oge, %346, %347 : vector<16x64xf32>
    %cst_57 = arith.constant 0.00999999977 : f32
    %349 = vector.broadcast %cst_57 : f32 to vector<16x64xf32>
    %350 = arith.mulf %349, %346 : vector<16x64xf32>
    %351 = arith.select %348, %346, %350 : vector<16x64xi1>, vector<16x64xf32>
    %352 = arith.truncf %351 : vector<16x64xf32> to vector<16x64xbf16>
    %c0_58 = arith.constant 0 : index
    %c0_59 = arith.constant 0 : index
    %353 = vector.load %arg10[%c0_58, %c0_59] : memref<64x32xbf16, #tpu.memory_space<vmem>>, vector<64x32xbf16>
    %cst_60 = arith.constant dense<0.000000e+00> : vector<16x32xf32>
    %354 = tpu.matmul %352, %353, %cst_60 {dimension_numbers = #tpu.dot_dimension_numbers<[1], [0], [0], [1], [0, 0, 1, 1], [], []>} : vector<16x64xbf16>, vector<64x32xbf16>, vector<16x32xf32> -> vector<16x32xf32>
    %c0_61 = arith.constant 0 : index
    %c0_62 = arith.constant 0 : index
    %355 = vector.load %arg11[%c0_61, %c0_62] : memref<1x32xf32, #tpu.memory_space<vmem>>, vector<1x32xf32>
    %356 = vector.broadcast %355 : vector<1x32xf32> to vector<16x32xf32>
    %357 = arith.addf %354, %356 : vector<16x32xf32>
    %cst_63 = arith.constant 0.000000e+00 : f32
    %358 = vector.broadcast %cst_63 : f32 to vector<16x32xf32>
    %359 = arith.cmpf oge, %357, %358 : vector<16x32xf32>
    %cst_64 = arith.constant 0.00999999977 : f32
    %360 = vector.broadcast %cst_64 : f32 to vector<16x32xf32>
    %361 = arith.mulf %360, %357 : vector<16x32xf32>
    %362 = arith.select %359, %357, %361 : vector<16x32xi1>, vector<16x32xf32>
    %363 = arith.truncf %362 : vector<16x32xf32> to vector<16x32xbf16>
    %c0_65 = arith.constant 0 : index
    %c0_66 = arith.constant 0 : index
    %364 = vector.load %arg12[%c0_65, %c0_66] : memref<32x128xbf16, #tpu.memory_space<vmem>>, vector<32x128xbf16>
    %cst_67 = arith.constant dense<0.000000e+00> : vector<16x128xf32>
    %365 = tpu.matmul %363, %364, %cst_67 {dimension_numbers = #tpu.dot_dimension_numbers<[1], [0], [0], [1], [0, 0, 1, 1], [], []>} : vector<16x32xbf16>, vector<32x128xbf16>, vector<16x128xf32> -> vector<16x128xf32>
    %c0_68 = arith.constant 0 : index
    %c0_69 = arith.constant 0 : index
    %366 = vector.load %arg13[%c0_68, %c0_69] : memref<1x128xf32, #tpu.memory_space<vmem>>, vector<1x128xf32>
    %367 = vector.broadcast %366 : vector<1x128xf32> to vector<16x128xf32>
    %368 = arith.addf %365, %367 : vector<16x128xf32>
    %c0_70 = arith.constant 0 : index
    %c0_71 = arith.constant 0 : index
    %369 = vector.load %arg14[%c0_70, %c0_71] : memref<16x128xf32, #tpu.memory_space<vmem>>, vector<16x128xf32>
    tpu.vector_store %arg14[%c0_70, %c0_71], %368 {strides = array<i32>} : memref<16x128xf32, #tpu.memory_space<vmem>>, vector<16x128xf32>,
    return
  }
  func.func @transform_0(%arg0: i32) -> (i32, i32, i32) {
    %c0_i32 = arith.constant 0 : i32
    %c0_i32_0 = arith.constant 0 : i32
    %c0_i32_1 = arith.constant 0 : i32
    return %c0_i32, %arg0, %c0_i32_0 : i32, i32, i32
  }
  func.func @transform_1(%arg0: i32) -> (i32, i32) {
    %c0_i32 = arith.constant 0 : i32
    %c0_i32_0 = arith.constant 0 : i32
    %c0_i32_1 = arith.constant 0 : i32
    return %c0_i32, %c0_i32_0 : i32, i32
  }
  func.func @transform_2(%arg0: i32) -> (i32, i32) {
    %c0_i32 = arith.constant 0 : i32
    %c0_i32_0 = arith.constant 0 : i32
    %c0_i32_1 = arith.constant 0 : i32
    return %c0_i32, %c0_i32_0 : i32, i32
  }
  func.func @transform_3(%arg0: i32) -> (i32, i32) {
    %c0_i32 = arith.constant 0 : i32
    %c0_i32_0 = arith.constant 0 : i32
    %c0_i32_1 = arith.constant 0 : i32
    return %c0_i32, %c0_i32_0 : i32, i32
  }
  func.func @transform_4(%arg0: i32) -> (i32, i32) {
    %c0_i32 = arith.constant 0 : i32
    %c0_i32_0 = arith.constant 0 : i32
    %c0_i32_1 = arith.constant 0 : i32
    return %c0_i32, %c0_i32_0 : i32, i32
  }
  func.func @transform_5(%arg0: i32) -> (i32, i32) {
    %c0_i32 = arith.constant 0 : i32
    %c0_i32_0 = arith.constant 0 : i32
    %c0_i32_1 = arith.constant 0 : i32
    return %c0_i32, %c0_i32_0 : i32, i32
  }
  func.func @transform_6(%arg0: i32) -> (i32, i32) {
    %c0_i32 = arith.constant 0 : i32
    %c0_i32_0 = arith.constant 0 : i32
    %c0_i32_1 = arith.constant 0 : i32
    return %c0_i32, %c0_i32_0 : i32, i32
  }
  func.func @transform_7(%arg0: i32) -> (i32, i32) {
    %c0_i32 = arith.constant 0 : i32
    %c0_i32_0 = arith.constant 0 : i32
    %c0_i32_1 = arith.constant 0 : i32
    return %c0_i32, %c0_i32_0 : i32, i32
  }
  func.func @transform_8(%arg0: i32) -> (i32, i32) {
    %c0_i32 = arith.constant 0 : i32
    %c0_i32_0 = arith.constant 0 : i32
    %c0_i32_1 = arith.constant 0 : i32
    return %c0_i32, %c0_i32_0 : i32, i32
  }
  func.func @transform_9(%arg0: i32) -> (i32, i32) {
    %c0_i32 = arith.constant 0 : i32
    %c0_i32_0 = arith.constant 0 : i32
    %c0_i32_1 = arith.constant 0 : i32
    return %c0_i32, %c0_i32_0 : i32, i32
  }
  func.func @transform_10(%arg0: i32) -> (i32, i32) {
    %c0_i32 = arith.constant 0 : i32
    %c0_i32_0 = arith.constant 0 : i32
    %c0_i32_1 = arith.constant 0 : i32
    return %c0_i32, %c0_i32_0 : i32, i32
  }
  func.func @transform_11(%arg0: i32) -> (i32, i32) {
    %c0_i32 = arith.constant 0 : i32
    %c0_i32_0 = arith.constant 0 : i32
    %c0_i32_1 = arith.constant 0 : i32
    return %c0_i32, %c0_i32_0 : i32, i32
  }
  func.func @transform_12(%arg0: i32) -> (i32, i32) {
    %c0_i32 = arith.constant 0 : i32
    %c0_i32_0 = arith.constant 0 : i32
    %c0_i32_1 = arith.constant 0 : i32
    return %c0_i32, %c0_i32_0 : i32, i32
  }
  func.func @transform_13(%arg0: i32) -> (i32, i32) {
    %c0_i32 = arith.constant 0 : i32
    %c0_i32_0 = arith.constant 0 : i32
    return %arg0, %c0_i32 : i32, i32
  }
}

</mosaic_0001>

<bundles_post_ra>
// kernel: lstm_forward.1
= control target key start
LH: loop header
LB: loop body
LE: loop exit
PB: predicated region body
PF: predicated region fallthrough
CT: control target
= control target key end

     0   :  { %vm106_vm0 = vcmask 1041408   ;;  %v2794_v1 = vmov 0.0   ;;  %vm2795_vm1 = vmmov 0   ;;  %vm81_vm2 = vcmask 31744   ;;  %s2797_s22 = smov 32   ;;  %s3416_s1 = inlined_call_operand.vmem [shape: bf16[4,128], index: 1, kind: input, shape index: {}]   ;;  %s3417_s2 = inlined_call_operand.vmem [shape: bf16[32,128], index: 2, kind: input, shape index: {}]   ;;  %s3418_s0 = inlined_call_operand.vmem [shape: f32[8,16,4], index: 0, kind: input, shape index: {}]   ;;  %s3419_s3 = inlined_call_operand.vmem [shape: f32[1,128], index: 3, kind: input, shape index: {}]   ;;  %s3420_s4 = inlined_call_operand.vmem [shape: bf16[32,128], index: 4, kind: input, shape index: {}]   ;;  %s3421_s5 = inlined_call_operand.vmem [shape: bf16[32,128], index: 5, kind: input, shape index: {}]   ;;  %s3422_s6 = inlined_call_operand.vmem [shape: f32[1,128], index: 6, kind: input, shape index: {}]   ;;  %s3423_s7 = inlined_call_operand.vmem [shape: bf16[32,64], index: 7, kind: input, shape index: {}]   ;;  %s3424_s9 = inlined_call_operand.vmem [shape: bf16[64,32], index: 9, kind: input, shape index: {}]   ;;  %s3425_s8 = inlined_call_operand.vmem [shape: f32[1,64], index: 8, kind: input, shape index: {}]   ;;  %s3426_s11 = inlined_call_operand.vmem [shape: bf16[32,128], index: 11, kind: input, shape index: {}]   ;;  %s3427_s10 = inlined_call_operand.vmem [shape: f32[1,32], index: 10, kind: input, shape index: {}]   ;;  %s3428_s12 = inlined_call_operand.vmem [shape: f32[1,128], index: 12, kind: input, shape index: {}]   ;;  %s3429_s13 = inlined_call_operand.vmem [shape: f32[16,128], index: 13, kind: output, shape index: {}]  }
   0x1   :  { %v61_v0 = vld [vmem:[%s3416_s1] sm:$0x3]  ;;  %2342 = vmatprep.subr.bf16.mxu1 %v2794_v1  ;;  %2346 = vmatprep.mubr.msk.bf16.mxu1 %vm2795_vm1, %v2794_v1  ;;  %v2878_v3 = vld [vmem:[%s3417_s2 + $0x8] sm:$0xff]   ;;  %v47_v7 = vld [vmem:[%s3418_s0 + $0x10] sm:$0xff]  ;;  %v2796_v11 = vmov 0   ;;  %vm219_vm3 = vcmask 261120  }
   0x2   :  { %2518 = vmatprep.subr.msk.bf16.mxu0 %vm106_vm0, %v61_v0  ;;  %v108_v2 = vsel %vm106_vm0, %v61_v0, 0  ;;  %v45_v4 = vld [vmem:[%s3418_s0] sm:$0xff]  ;;  %v46_v5 = vld [vmem:[%s3418_s0 + $0x8] sm:$0xff]  ;;  %v48_v8 = vld [vmem:[%s3418_s0 + $0x18] sm:$0xff]  ;;  %2343 = vmatpush3.bf16.msra.mxu1 %v2878_v3  ;;  %vm2037_vm6 = vcmask 523264  }
   0x3   :  { %2325 = vmatpush3.bf16.msra.mxu0 %v108_v2  ;;  %v67_v6 = vpack.c.bf16 %v46_v5, %v45_v4  ;;  %v68_v9 = vpack.c.bf16 %v48_v8, %v47_v7  ;;  %v2896_v10 = vld [vmem:[%s3417_s2] sm:$0xff]   ;;  %2344 = vmatprep.subr.bf16.mxu1 %v2794_v1 }
   0x4   :  { %2374 = vmatprep.subr.bf16.mxu0 %v2794_v1  ;;  %v2920_v13 = vld [vmem:[%s3419_s3] ss:$0 sm:$0xff]  ;;  %s2798_s3 = smov 64  }
   0x5   :  { %2326 = vmatprep.mubr.msk.bf16.mxu0 %vm81_vm2, %v67_v6 }
   0x6   :  { %2327 = vmatmul.mubr.msk.bf16.vlgmr.msra.gmra.mxu0 %vm81_vm2, %v68_v9  ;;  %2345 = vmatpush3.bf16.msra.mxu1 %v2896_v10 }
   0x7   :  { %2375 = vmatpush3.bf16.msra.mxu0 %v2878_v3  ;;  %2350 = vmatprep.subr.bf16.mxu1 %v2794_v1 }
   0x8   :  { %2376 = vmatprep.subr.bf16.mxu0 %v2794_v1 }
   0x9   :  { %2347 = vmatmul.mubr.bf16.vlgmr.msra.gmra.mxu1 %v2796_v11 }
   0xa   :  { %2351 = vmatpush3.bf16.msra.mxu1 %v2878_v3  ;;  %2354 = vmatprep.mubr.msk.bf16.mxu1 %vm2795_vm1, %v2794_v1 }
   0xb   :  { %2377 = vmatpush3.bf16.msra.mxu0 %v2896_v10  ;;  %2352 = vmatprep.subr.bf16.mxu1 %v2794_v1 }
   0xc   :  { %2390 = vmatprep.subr.bf16.mxu0 %v2794_v1 }
   0xe   :  { %2353 = vmatpush3.bf16.msra.mxu1 %v2896_v10 }
   0xf   :  { %2358 = vmatprep.subr.bf16.mxu1 %v2794_v1 }
  0xc6   :  { %v2915_v12 = vpop.f32.mrf.mxu0 }
  0xc7   :  { %v153_v53 = vadd.f32 %v2915_v12, %v2920_v13 }
  0xc8   :  { %v144_v14 = vpop.f32.mrf.mxu0 }
  0xc9   :  { %v145_v15 = vadd.f32 %v2920_v13, %v144_v14  ;;  %v257_v17 = vpop.f32.mrf.mxu1 }
  0xca   :  { %v2923_v16 = vpop.f32.mrf.mxu0 }
  0xcb   :  { %v264_v18 = vadd.f32 %v257_v17, %v145_v15  ;;  %v2348_v21 = vpop.f32.mrf.mxu1  ;;  %v156_v57 = vadd.f32 %v2923_v16, %v2920_v13 }
  0xcc   :  { %v147_v19 = vpop.f32.mrf.mxu0 }
  0xcd   :  { %v148_v20 = vadd.f32 %v2920_v13, %v147_v19  ;;  %2538 = vtanh.f32 %v264_v18  ;;  %v260_v22 = vpop.f32.mrf.mxu1  ;;  %v2173_v27 = vmul.f32 -1.442695, %v264_v18 }
  0xcf   :  { %v265_v23 = vadd.f32 %v260_v22, %v148_v20  ;;  %v2349_v24 = vpop.f32.mrf.mxu1  ;;  %v49_v22 = vld [vmem:[%s3418_s0 + $0x20] sm:$0xff] }
  0xd0   :  { %v51_v24 = vld [vmem:[%s3418_s0 + $0x30] sm:$0xff] }
  0xd1   :  { %2540 = vtanh.f32 %v265_v23  ;;  %v2174_v28 = vmul.f32 -1.442695, %v265_v23  ;;  %v50_v23 = vld [vmem:[%s3418_s0 + $0x28] sm:$0xff] }
  0xd2   :  { %2542 = vpow2.f32 %v2173_v27 }
  0xd3   :  { %2544 = vpow2.f32 %v2174_v28 }
  0xda   :  { %v2539_v25 = vpop.eup %2538 }
  0xdb   :  { %284 = vrot.lane.b32.xlu0 %v2539_v25, %s2797_s22  ;;  %v69_v25 = vpack.c.bf16 %v50_v23, %v49_v22 }
  0xdd   :  { %2330 = vmatprep.mubr.msk.bf16.mxu0 %vm81_vm2, %v69_v25 }
  0xde   :  { %v2541_v26 = vpop.eup %2540 }
  0xdf   :  { %286 = vrot.lane.b32.xlu0 %v2541_v26, %s2797_s22  ;;  %v2543_v29 = vpop.eup %2542  ;;  %v52_v26 = vld [vmem:[%s3418_s0 + $0x38] sm:$0xff] }
  0xe0   :  { %v272_v30 = vadd.f32 1.0, %v2543_v29  ;;  %v2545_v31 = vpop.eup %2544  ;;  %v70_v27 = vpack.c.bf16 %v52_v26, %v51_v24 }
  0xe1   :  { %v273_v32 = vadd.f32 1.0, %v2545_v31 }
  0xe2   :  { %2546 = vrcp.f32 %v272_v30  ;;  %2331 = vmatmul.mubr.msk.bf16.gmra.mxu0 %vm81_vm2, %v70_v27 }
  0xe3   :  { %2548 = vrcp.f32 %v273_v32 }
  0xef   :  { %v2547_v33 = vpop.eup %2546 }
  0xf0   :  { %v2549_v36 = vpop.eup %2548  ;;  %v280_v39 = vmul.f32 0.0, %v2547_v33 }
  0xf1   :  { %v281_v42 = vmul.f32 0.0, %v2549_v36 }
 0x14d   :  { %v285_v34 = vpop.permute.xlu0 %284 }
 0x14e   :  { %v290_v35 = vmul.f32 %v2547_v33, %v285_v34 }
 0x150   :  { %294 = vrot.lane.b32.xlu1 %v290_v35, %s2797_s22 }
 0x151   :  { %v287_v37 = vpop.permute.xlu0 %286 }
 0x152   :  { %v291_v38 = vmul.f32 %v2549_v36, %v287_v37 }
 0x154   :  { %296 = vrot.lane.b32.xlu1 %v291_v38, %s2797_s22 }
 0x1c2   :  { %v295_v40 = vpop.permute.xlu1 %294 }
 0x1c3   :  { %v300_v41 = vadd.f32 %v295_v40, %v280_v39 }
 0x1c5   :  { %2550 = vtanh.f32 %v300_v41 }
 0x1c6   :  { %v297_v43 = vpop.permute.xlu1 %296 }
 0x1c7   :  { %v301_v44 = vadd.f32 %v297_v43, %v281_v42 }
 0x1c9   :  { %2552 = vtanh.f32 %v301_v44 }
 0x1d2   :  { %v2551_v45 = vpop.eup %2550 }
 0x1d3   :  { %306 = vrot.lane.b32.xlu0 %v2551_v45, %s2797_s22 }
 0x1d6   :  { %v2553_v46 = vpop.eup %2552 }
 0x1d7   :  { %308 = vrot.lane.b32.xlu1 %v2553_v46, %s2797_s22 }
 0x245   :  { %v307_v47 = vpop.permute.xlu0 %306 }
 0x246   :  { %v312_v49 = vmul.f32 %v2547_v33, %v307_v47 }
 0x249   :  { %v309_v48 = vpop.permute.xlu1 %308 }
 0x24a   :  { %v313_v50 = vmul.f32 %v2549_v36, %v309_v48  ;;  %v2332_v36 = vpop.f32.mrf.mxu0 }
 0x24c   :  { %v314_v51 = vpack.c.bf16 %v313_v50, %v312_v49  ;;  %v160_v37 = vpop.f32.mrf.mxu0 }
 0x24d   :  { %v161_v39 = vadd.f32 %v2920_v13, %v160_v37 }
 0x24e   :  { %316 = vrot.lane.b32.xlu0 %v314_v51, %s2798_s3  ;;  %v2984_v38 = vpop.f32.mrf.mxu0 }
 0x24f   :  { %v172_v22 = vadd.f32 %v2984_v38, %v2920_v13 }
 0x250   :  { %v163_v40 = vpop.f32.mrf.mxu0 }
 0x2c0   :  { %v2933_v52 = vpop.permute.xlu0 %316 }
 0x2c1   :  { %2355 = vmatmul.mubr.msk.bf16.vlgmr.msra.gmra.mxu1 %vm219_vm3, %v2933_v52 }
 0x2c2   :  { %2359 = vmatpush3.bf16.msra.mxu1 %v2878_v3  ;;  %2362 = vmatprep.mubr.msk.bf16.mxu1 %vm2795_vm1, %v2794_v1 }
 0x2c3   :  { %2360 = vmatprep.subr.bf16.mxu1 %v2794_v1 }
 0x2c6   :  { %2361 = vmatpush3.bf16.msra.mxu1 %v2896_v10 }
 0x2c7   :  { %2366 = vmatprep.subr.bf16.mxu1 %v2794_v1 }
 0x381   :  { %v355_v54 = vpop.f32.mrf.mxu1 }
 0x382   :  { %v362_v55 = vadd.f32 %v355_v54, %v153_v53 }
 0x383   :  { %v2356_v56 = vpop.f32.mrf.mxu1 }
 0x384   :  { %2554 = vtanh.f32 %v362_v55  ;;  %v2176_v63 = vmul.f32 -1.442695, %v362_v55 }
 0x385   :  { %v358_v58 = vpop.f32.mrf.mxu1 }
 0x386   :  { %v363_v59 = vadd.f32 %v358_v58, %v156_v57 }
 0x387   :  { %v2357_v60 = vpop.f32.mrf.mxu1 }
 0x388   :  { %2556 = vtanh.f32 %v363_v59  ;;  %v2177_v0 = vmul.f32 -1.442695, %v363_v59 }
 0x389   :  { %2558 = vpow2.f32 %v2176_v63 }
 0x38a   :  { %2560 = vpow2.f32 %v2177_v0 }
 0x391   :  { %v2555_v61 = vpop.eup %2554 }
 0x392   :  { %382 = vrot.lane.b32.xlu1 %v2555_v61, %s2797_s22 }
 0x395   :  { %v2557_v62 = vpop.eup %2556 }
 0x396   :  { %384 = vrot.lane.b32.xlu0 %v2557_v62, %s2797_s22  ;;  %v2559_v2 = vpop.eup %2558 }
 0x397   :  { %v370_v4 = vadd.f32 1.0, %v2559_v2  ;;  %v2561_v5 = vpop.eup %2560 }
 0x398   :  { %v371_v6 = vadd.f32 1.0, %v2561_v5 }
 0x399   :  { %2562 = vrcp.f32 %v370_v4 }
 0x39a   :  { %2564 = vrcp.f32 %v371_v6 }
 0x3a6   :  { %v2563_v7 = vpop.eup %2562 }
 0x3a7   :  { %v2565_v12 = vpop.eup %2564  ;;  %v378_v16 = vmul.f32 %v2563_v7, %v300_v41 }
 0x3a8   :  { %v379_v19 = vmul.f32 %v2565_v12, %v301_v44  ;;  %v164_v44 = vadd.f32 %v2920_v13, %v163_v40 }
 0x404   :  { %v383_v8 = vpop.permute.xlu1 %382 }
 0x405   :  { %v388_v9 = vmul.f32 %v2563_v7, %v383_v8 }
 0x407   :  { %392 = vrot.lane.b32.xlu1 %v388_v9, %s2797_s22 }
 0x408   :  { %v385_v14 = vpop.permute.xlu0 %384 }
 0x409   :  { %v389_v15 = vmul.f32 %v2565_v12, %v385_v14 }
 0x40b   :  { %394 = vrot.lane.b32.xlu0 %v389_v15, %s2797_s22 }
 0x479   :  { %v393_v17 = vpop.permute.xlu1 %392 }
 0x47a   :  { %v2951_v18 = vadd.f32 %v393_v17, %v378_v16 }
 0x47c   :  { %2566 = vtanh.f32 %v2951_v18 }
 0x47d   :  { %v395_v20 = vpop.permute.xlu0 %394 }
 0x47e   :  { %v2954_v21 = vadd.f32 %v395_v20, %v379_v19 }
 0x480   :  { %2568 = vtanh.f32 %v2954_v21 }
 0x489   :  { %v2567_v28 = vpop.eup %2566 }
 0x48a   :  { %404 = vrot.lane.b32.xlu1 %v2567_v28, %s2797_s22 }
 0x48d   :  { %v2569_v29 = vpop.eup %2568 }
 0x48e   :  { %406 = vrot.lane.b32.xlu0 %v2569_v29, %s2797_s22 }
 0x4fc   :  { %v405_v30 = vpop.permute.xlu1 %404 }
 0x4fd   :  { %v410_v32 = vmul.f32 %v2563_v7, %v405_v30 }
 0x500   :  { %v407_v31 = vpop.permute.xlu0 %406 }
 0x501   :  { %v411_v33 = vmul.f32 %v2565_v12, %v407_v31 }
 0x503   :  { %v412_v34 = vpack.c.bf16 %v411_v33, %v410_v32 }
 0x505   :  { %414 = vrot.lane.b32.xlu1 %v412_v34, %s2798_s3 }
 0x577   :  { %v2974_v35 = vpop.permute.xlu1 %414 }
 0x578   :  { %2363 = vmatmul.mubr.msk.bf16.vlgmr.msra.gmra.mxu1 %vm219_vm3, %v2974_v35 }
 0x579   :  { %2367 = vmatpush3.bf16.msra.mxu1 %v2878_v3  ;;  %2370 = vmatprep.mubr.msk.bf16.mxu1 %vm2795_vm1, %v2794_v1 }
 0x57a   :  { %2368 = vmatprep.subr.bf16.mxu1 %v2794_v1 }
 0x57d   :  { %2369 = vmatpush3.bf16.msra.mxu1 %v2896_v10 }
 0x57e   :  { %2382 = vmatprep.subr.bf16.mxu1 %v2794_v1 }
 0x638   :  { %v453_v41 = vpop.f32.mrf.mxu1 }
 0x639   :  { %v460_v42 = vadd.f32 %v453_v41, %v161_v39 }
 0x63a   :  { %v2364_v43 = vpop.f32.mrf.mxu1 }
 0x63b   :  { %2570 = vtanh.f32 %v460_v42  ;;  %v2179_v50 = vmul.f32 -1.442695, %v460_v42 }
 0x63c   :  { %v456_v45 = vpop.f32.mrf.mxu1 }
 0x63d   :  { %v461_v46 = vadd.f32 %v456_v45, %v164_v44 }
 0x63e   :  { %v2365_v47 = vpop.f32.mrf.mxu1 }
 0x63f   :  { %2572 = vtanh.f32 %v461_v46  ;;  %v2180_v51 = vmul.f32 -1.442695, %v461_v46  ;;  %v53_v47 = vld [vmem:[%s3418_s0 + $0x40] sm:$0xff] }
 0x640   :  { %2574 = vpow2.f32 %v2179_v50 }
 0x641   :  { %2576 = vpow2.f32 %v2180_v51  ;;  %v56_v51 = vld [vmem:[%s3418_s0 + $0x58] sm:$0xff] }
 0x648   :  { %v2571_v48 = vpop.eup %2570 }
 0x649   :  { %480 = vrot.lane.b32.xlu0 %v2571_v48, %s2797_s22  ;;  %v54_v48 = vld [vmem:[%s3418_s0 + $0x48] sm:$0xff] }
 0x64a   :  { %v71_v50 = vpack.c.bf16 %v54_v48, %v53_v47 }
 0x64c   :  { %v2573_v49 = vpop.eup %2572  ;;  %2334 = vmatprep.mubr.msk.bf16.mxu0 %vm81_vm2, %v71_v50 }
 0x64d   :  { %482 = vrot.lane.b32.xlu1 %v2573_v49, %s2797_s22  ;;  %v2575_v53 = vpop.eup %2574  ;;  %v55_v49 = vld [vmem:[%s3418_s0 + $0x50] sm:$0xff] }
 0x64e   :  { %v468_v54 = vadd.f32 1.0, %v2575_v53  ;;  %v2577_v55 = vpop.eup %2576  ;;  %v57_v53 = vld [vmem:[%s3418_s0 + $0x60] sm:$0xff] }
 0x64f   :  { %v469_v56 = vadd.f32 1.0, %v2577_v55  ;;  %v72_v55 = vpack.c.bf16 %v56_v51, %v55_v49 }
 0x650   :  { %2578 = vrcp.f32 %v468_v54  ;;  %v58_v54 = vld [vmem:[%s3418_s0 + $0x68] sm:$0xff] }
 0x651   :  { %2580 = vrcp.f32 %v469_v56  ;;  %v73_v56 = vpack.c.bf16 %v58_v54, %v57_v53  ;;  %2335 = vmatmul.mubr.msk.bf16.gmra.mxu0 %vm81_vm2, %v72_v55 }
 0x653   :  { %2338 = vmatprep.mubr.msk.bf16.mxu0 %vm81_vm2, %v73_v56 }
 0x65d   :  { %v2579_v57 = vpop.eup %2578 }
 0x65e   :  { %v2581_v60 = vpop.eup %2580  ;;  %v476_v63 = vmul.f32 %v2579_v57, %v2951_v18  ;;  %v169_v18 = vadd.f32 %v2332_v36, %v2920_v13 }
 0x65f   :  { %v477_v4 = vmul.f32 %v2581_v60, %v2954_v21 }
 0x6bb   :  { %v481_v58 = vpop.permute.xlu0 %480 }
 0x6bc   :  { %v486_v59 = vmul.f32 %v2579_v57, %v481_v58  ;;  %v59_v58 = vld [vmem:[%s3418_s0 + $0x70] sm:$0xff] }
 0x6be   :  { %490 = vrot.lane.b32.xlu0 %v486_v59, %s2797_s22  ;;  %v60_v59 = vld [vmem:[%s3418_s0 + $0x78] sm:$0xff] }
 0x6bf   :  { %v483_v61 = vpop.permute.xlu1 %482 }
 0x6c0   :  { %v487_v62 = vmul.f32 %v2581_v60, %v483_v61  ;;  %v74_v61 = vpack.c.bf16 %v60_v59, %v59_v58 }
 0x6c2   :  { %492 = vrot.lane.b32.xlu1 %v487_v62, %s2797_s22  ;;  %2339 = vmatmul.mubr.msk.bf16.gmra.mxu0 %vm81_vm2, %v74_v61 }
 0x6c3   :  { %2378 = vmatprep.mubr.msk.bf16.mxu0 %vm2795_vm1, %v2794_v1 }
 0x730   :  { %v491_v0 = vpop.permute.xlu0 %490 }
 0x731   :  { %v496_v2 = vadd.f32 %v491_v0, %v476_v63 }
 0x733   :  { %2582 = vtanh.f32 %v496_v2 }
 0x734   :  { %v493_v5 = vpop.permute.xlu1 %492 }
 0x735   :  { %v497_v6 = vadd.f32 %v493_v5, %v477_v4 }
 0x737   :  { %2584 = vtanh.f32 %v497_v6 }
 0x740   :  { %v2583_v7 = vpop.eup %2582 }
 0x741   :  { %502 = vrot.lane.b32.xlu0 %v2583_v7, %s2797_s22 }
 0x744   :  { %v2585_v8 = vpop.eup %2584 }
 0x745   :  { %504 = vrot.lane.b32.xlu1 %v2585_v8, %s2797_s22 }
 0x7b3   :  { %v503_v9 = vpop.permute.xlu0 %502 }
 0x7b4   :  { %v508_v14 = vmul.f32 %v2579_v57, %v503_v9 }
 0x7b7   :  { %v505_v12 = vpop.permute.xlu1 %504 }
 0x7b8   :  { %v509_v15 = vmul.f32 %v2581_v60, %v505_v12 }
 0x7ba   :  { %v510_v16 = vpack.c.bf16 %v509_v15, %v508_v14 }
 0x7bc   :  { %512 = vrot.lane.b32.xlu0 %v510_v16, %s2798_s3 }
 0x82e   :  { %v2997_v17 = vpop.permute.xlu0 %512 }
 0x82f   :  { %2371 = vmatmul.mubr.msk.bf16.vlgmr.msra.gmra.mxu1 %vm219_vm3, %v2997_v17 }
 0x830   :  { %2383 = vmatpush3.bf16.msra.mxu1 %v2878_v3  ;;  %2386 = vmatprep.mubr.msk.bf16.mxu1 %vm2795_vm1, %v2794_v1 }
 0x831   :  { %2384 = vmatprep.subr.bf16.mxu1 %v2794_v1 }
 0x834   :  { %2385 = vmatpush3.bf16.msra.mxu1 %v2896_v10 }
 0x835   :  { %2398 = vmatprep.subr.bf16.mxu1 %v2794_v1 }
 0x8ef   :  { %v551_v19 = vpop.f32.mrf.mxu1 }
 0x8f0   :  { %v558_v20 = vadd.f32 %v551_v19, %v169_v18 }
 0x8f1   :  { %v2372_v21 = vpop.f32.mrf.mxu1 }
 0x8f2   :  { %2586 = vtanh.f32 %v558_v20  ;;  %v2182_v28 = vmul.f32 -1.442695, %v558_v20 }
 0x8f3   :  { %v554_v23 = vpop.f32.mrf.mxu1 }
 0x8f4   :  { %v559_v24 = vadd.f32 %v554_v23, %v172_v22 }
 0x8f5   :  { %v2373_v25 = vpop.f32.mrf.mxu1 }
 0x8f6   :  { %2588 = vtanh.f32 %v559_v24  ;;  %v2183_v29 = vmul.f32 -1.442695, %v559_v24 }
 0x8f7   :  { %2590 = vpow2.f32 %v2182_v28 }
 0x8f8   :  { %2592 = vpow2.f32 %v2183_v29 }
 0x8ff   :  { %v2587_v26 = vpop.eup %2586 }
 0x900   :  { %578 = vrot.lane.b32.xlu1 %v2587_v26, %s2797_s22 }
 0x903   :  { %v2589_v27 = vpop.eup %2588 }
 0x904   :  { %580 = vrot.lane.b32.xlu0 %v2589_v27, %s2797_s22  ;;  %v2591_v30 = vpop.eup %2590 }
 0x905   :  { %v566_v31 = vadd.f32 1.0, %v2591_v30  ;;  %v2593_v32 = vpop.eup %2592 }
 0x906   :  { %v567_v33 = vadd.f32 1.0, %v2593_v32 }
 0x907   :  { %2594 = vrcp.f32 %v566_v31 }
 0x908   :  { %2596 = vrcp.f32 %v567_v33 }
 0x914   :  { %v2595_v34 = vpop.eup %2594 }
 0x915   :  { %v2597_v38 = vpop.eup %2596  ;;  %v574_v41 = vmul.f32 %v2595_v34, %v496_v2 }
 0x916   :  { %v575_v44 = vmul.f32 %v2597_v38, %v497_v6  ;;  %v3062_v6 = vpop.f32.mrf.mxu0 }
 0x918   :  { %v176_v7 = vpop.f32.mrf.mxu0 }
 0x919   :  { %v177_v18 = vadd.f32 %v2920_v13, %v176_v7 }
 0x91a   :  { %v3064_v8 = vpop.f32.mrf.mxu0 }
 0x91c   :  { %v179_v9 = vpop.f32.mrf.mxu0 }
 0x91d   :  { %v180_v22 = vadd.f32 %v2920_v13, %v179_v9 }
 0x91e   :  { %v3066_v12 = vpop.f32.mrf.mxu0 }
 0x920   :  { %v3068_v14 = vpop.f32.mrf.mxu0 }
 0x922   :  { %v3070_v15 = vpop.f32.mrf.mxu0 }
 0x924   :  { %v3072_v16 = vpop.f32.mrf.mxu0 }
 0x972   :  { %v579_v36 = vpop.permute.xlu1 %578 }
 0x973   :  { %v584_v37 = vmul.f32 %v2595_v34, %v579_v36 }
 0x975   :  { %588 = vrot.lane.b32.xlu1 %v584_v37, %s2797_s22 }
 0x976   :  { %v581_v39 = vpop.permute.xlu0 %580 }
 0x977   :  { %v585_v40 = vmul.f32 %v2597_v38, %v581_v39 }
 0x979   :  { %590 = vrot.lane.b32.xlu0 %v585_v40, %s2797_s22 }
 0x9e7   :  { %v589_v42 = vpop.permute.xlu1 %588 }
 0x9e8   :  { %v3014_v43 = vadd.f32 %v589_v42, %v574_v41 }
 0x9ea   :  { %2598 = vtanh.f32 %v3014_v43 }
 0x9eb   :  { %v591_v45 = vpop.permute.xlu0 %590 }
 0x9ec   :  { %v3017_v46 = vadd.f32 %v591_v45, %v575_v44 }
 0x9ee   :  { %2600 = vtanh.f32 %v3017_v46 }
 0x9f7   :  { %v2599_v57 = vpop.eup %2598 }
 0x9f8   :  { %600 = vrot.lane.b32.xlu1 %v2599_v57, %s2797_s22 }
 0x9fb   :  { %v2601_v60 = vpop.eup %2600 }
 0x9fc   :  { %602 = vrot.lane.b32.xlu0 %v2601_v60, %s2797_s22  ;;  %v188_v60 = vadd.f32 %v3064_v8, %v2920_v13 }
 0xa6a   :  { %v601_v62 = vpop.permute.xlu1 %600 }
 0xa6b   :  { %v606_v0 = vmul.f32 %v2595_v34, %v601_v62 }
 0xa6e   :  { %v603_v63 = vpop.permute.xlu0 %602 }
 0xa6f   :  { %v607_v2 = vmul.f32 %v2597_v38, %v603_v63 }
 0xa71   :  { %v608_v4 = vpack.c.bf16 %v607_v2, %v606_v0 }
 0xa73   :  { %610 = vrot.lane.b32.xlu1 %v608_v4, %s2798_s3 }
 0xae5   :  { %v3053_v5 = vpop.permute.xlu1 %610 }
 0xae6   :  { %2379 = vmatmul.mubr.msk.bf16.vlgmr.msra.gmra.mxu0 %vm219_vm3, %v3053_v5 }
 0xae7   :  { %2391 = vmatpush3.bf16.msra.mxu0 %v2878_v3  ;;  %2394 = vmatprep.mubr.msk.bf16.mxu0 %vm2795_vm1, %v2794_v1 }
 0xae8   :  { %2392 = vmatprep.subr.bf16.mxu0 %v2794_v1 }
 0xaeb   :  { %2393 = vmatpush3.bf16.msra.mxu0 %v2896_v10 }
 0xba6   :  { %v649_v19 = vpop.f32.mrf.mxu0 }
 0xba7   :  { %v656_v20 = vadd.f32 %v649_v19, %v177_v18 }
 0xba8   :  { %v2380_v21 = vpop.f32.mrf.mxu0 }
 0xba9   :  { %2602 = vtanh.f32 %v656_v20  ;;  %v2185_v28 = vmul.f32 -1.442695, %v656_v20 }
 0xbaa   :  { %v652_v23 = vpop.f32.mrf.mxu0 }
 0xbab   :  { %v657_v24 = vadd.f32 %v652_v23, %v180_v22 }
 0xbac   :  { %v2381_v25 = vpop.f32.mrf.mxu0 }
 0xbad   :  { %2604 = vtanh.f32 %v657_v24  ;;  %v2186_v29 = vmul.f32 -1.442695, %v657_v24 }
 0xbae   :  { %2606 = vpow2.f32 %v2185_v28 }
 0xbaf   :  { %2608 = vpow2.f32 %v2186_v29 }
 0xbb6   :  { %v2603_v26 = vpop.eup %2602 }
 0xbb7   :  { %676 = vrot.lane.b32.xlu0 %v2603_v26, %s2797_s22 }
 0xbba   :  { %v2605_v27 = vpop.eup %2604 }
 0xbbb   :  { %678 = vrot.lane.b32.xlu1 %v2605_v27, %s2797_s22  ;;  %v2607_v30 = vpop.eup %2606 }
 0xbbc   :  { %v664_v31 = vadd.f32 1.0, %v2607_v30  ;;  %v2609_v32 = vpop.eup %2608 }
 0xbbd   :  { %v665_v33 = vadd.f32 1.0, %v2609_v32 }
 0xbbe   :  { %2610 = vrcp.f32 %v664_v31  ;;  %v2526_v31 = vld [vmem:[%s3420_s4 + $0x8] sm:$0xff]  }
 0xbbf   :  { %2612 = vrcp.f32 %v665_v33  ;;  %2406 = vmatprep.subr.bf16.mxu0 %v2526_v31 }
 0xbcb   :  { %v2611_v34 = vpop.eup %2610 }
 0xbcc   :  { %v2613_v38 = vpop.eup %2612  ;;  %v672_v41 = vmul.f32 %v2611_v34, %v3014_v43 }
 0xbcd   :  { %v673_v45 = vmul.f32 %v2613_v38, %v3017_v46  ;;  %v185_v46 = vadd.f32 %v3062_v6, %v2920_v13 }
 0xc29   :  { %v677_v36 = vpop.permute.xlu0 %676 }
 0xc2a   :  { %v682_v37 = vmul.f32 %v2611_v34, %v677_v36 }
 0xc2c   :  { %686 = vrot.lane.b32.xlu0 %v682_v37, %s2797_s22 }
 0xc2d   :  { %v679_v39 = vpop.permute.xlu1 %678 }
 0xc2e   :  { %v683_v40 = vmul.f32 %v2613_v38, %v679_v39 }
 0xc30   :  { %688 = vrot.lane.b32.xlu1 %v683_v40, %s2797_s22 }
 0xc9e   :  { %v687_v42 = vpop.permute.xlu0 %686 }
 0xc9f   :  { %v692_v44 = vadd.f32 %v687_v42, %v672_v41 }
 0xca1   :  { %2614 = vtanh.f32 %v692_v44 }
 0xca2   :  { %v689_v47 = vpop.permute.xlu1 %688 }
 0xca3   :  { %v693_v48 = vadd.f32 %v689_v47, %v673_v45 }
 0xca5   :  { %2616 = vtanh.f32 %v693_v48 }
 0xcae   :  { %v2615_v49 = vpop.eup %2614 }
 0xcaf   :  { %698 = vrot.lane.b32.xlu0 %v2615_v49, %s2797_s22 }
 0xcb2   :  { %v2617_v50 = vpop.eup %2616 }
 0xcb3   :  { %700 = vrot.lane.b32.xlu1 %v2617_v50, %s2797_s22 }
 0xd21   :  { %v699_v51 = vpop.permute.xlu0 %698 }
 0xd22   :  { %v704_v54 = vmul.f32 %v2611_v34, %v699_v51 }
 0xd25   :  { %v701_v53 = vpop.permute.xlu1 %700 }
 0xd26   :  { %v705_v55 = vmul.f32 %v2613_v38, %v701_v53  ;;  %v2527_v38 = vld [vmem:[%s3420_s4] sm:$0xff]  }
 0xd28   :  { %v706_v56 = vpack.c.bf16 %v705_v55, %v704_v54 }
 0xd2a   :  { %708 = vrot.lane.b32.xlu0 %v706_v56, %s2798_s3 }
 0xd9c   :  { %v3085_v43 = vpop.permute.xlu0 %708 }
 0xd9d   :  { %2387 = vmatmul.mubr.msk.bf16.vlgmr.msra.gmra.mxu1 %vm219_vm3, %v3085_v43 }
 0xd9e   :  { %2399 = vmatpush3.bf16.msra.mxu1 %v2878_v3  ;;  %2402 = vmatprep.mubr.msk.bf16.mxu1 %vm2795_vm1, %v2794_v1 }
 0xd9f   :  { %2400 = vmatprep.subr.bf16.mxu1 %v2794_v1 }
 0xda2   :  { %2401 = vmatpush3.bf16.msra.mxu1 %v2896_v10 }
 0xda3   :  { %2426 = vmatprep.subr.bf16.mxu1 %v2794_v1 }
 0xe5d   :  { %v747_v57 = vpop.f32.mrf.mxu1 }
 0xe5e   :  { %v754_v58 = vadd.f32 %v747_v57, %v185_v46 }
 0xe5f   :  { %v2388_v59 = vpop.f32.mrf.mxu1 }
 0xe60   :  { %2618 = vtanh.f32 %v754_v58  ;;  %v2188_v0 = vmul.f32 -1.442695, %v754_v58 }
 0xe61   :  { %v750_v3 = vpop.f32.mrf.mxu1 }
 0xe62   :  { %v755_v61 = vadd.f32 %v750_v3, %v188_v60 }
 0xe63   :  { %v2389_v62 = vpop.f32.mrf.mxu1 }
 0xe64   :  { %2620 = vtanh.f32 %v755_v61  ;;  %v2189_v2 = vmul.f32 -1.442695, %v755_v61 }
 0xe65   :  { %2622 = vpow2.f32 %v2188_v0  ;;  %v3159_v0 = vld [vmem:[%s3421_s5] sm:$0xff]  }
 0xe66   :  { %2624 = vpow2.f32 %v2189_v2 }
 0xe6d   :  { %v2619_v63 = vpop.eup %2618 }
 0xe6e   :  { %774 = vrot.lane.b32.xlu1 %v2619_v63, %s2797_s22 }
 0xe71   :  { %v2621_v10 = vpop.eup %2620 }
 0xe72   :  { %776 = vrot.lane.b32.xlu0 %v2621_v10, %s2797_s22  ;;  %v2623_v4 = vpop.eup %2622  ;;  %v3152_v10 = vld [vmem:[%s3421_s5 + $0x8] sm:$0xff]  }
 0xe73   :  { %v762_v6 = vadd.f32 1.0, %v2623_v4  ;;  %v2625_v7 = vpop.eup %2624 }
 0xe74   :  { %v763_v8 = vadd.f32 1.0, %v2625_v7 }
 0xe75   :  { %2626 = vrcp.f32 %v762_v6 }
 0xe76   :  { %2628 = vrcp.f32 %v763_v8 }
 0xe82   :  { %v2627_v9 = vpop.eup %2626 }
 0xe83   :  { %v2629_v20 = vpop.eup %2628  ;;  %v770_v23 = vmul.f32 %v2627_v9, %v692_v44 }
 0xe84   :  { %v771_v26 = vmul.f32 %v2629_v20, %v693_v48 }
 0xee0   :  { %v775_v18 = vpop.permute.xlu1 %774 }
 0xee1   :  { %v780_v19 = vmul.f32 %v2627_v9, %v775_v18 }
 0xee3   :  { %784 = vrot.lane.b32.xlu1 %v780_v19, %s2797_s22  ;;  %v201_v19 = vadd.f32 %v3066_v12, %v2920_v13 }
 0xee4   :  { %v777_v21 = vpop.permute.xlu0 %776 }
 0xee5   :  { %v781_v22 = vmul.f32 %v2629_v20, %v777_v21 }
 0xee7   :  { %786 = vrot.lane.b32.xlu0 %v781_v22, %s2797_s22 }
 0xf55   :  { %v785_v24 = vpop.permute.xlu1 %784 }
 0xf56   :  { %v3103_v25 = vadd.f32 %v785_v24, %v770_v23  ;;  %v204_v23 = vadd.f32 %v3070_v15, %v2920_v13 }
 0xf58   :  { %2630 = vtanh.f32 %v3103_v25 }
 0xf59   :  { %v787_v27 = vpop.permute.xlu0 %786 }
 0xf5a   :  { %v3106_v28 = vadd.f32 %v787_v27, %v771_v26  ;;  %v3194_v27 = vld [vmem:[%s3422_s6] ss:$0 sm:$0xff] }
 0xf5c   :  { %2632 = vtanh.f32 %v3106_v28 }
 0xf65   :  { %v2631_v29 = vpop.eup %2630 }
 0xf66   :  { %796 = vrot.lane.b32.xlu1 %v2631_v29, %s2797_s22 }
 0xf69   :  { %v2633_v30 = vpop.eup %2632 }
 0xf6a   :  { %798 = vrot.lane.b32.xlu0 %v2633_v30, %s2797_s22 }
 0xfd8   :  { %v797_v32 = vpop.permute.xlu1 %796 }
 0xfd9   :  { %v802_v34 = vmul.f32 %v2627_v9, %v797_v32 }
 0xfdc   :  { %v799_v33 = vpop.permute.xlu0 %798 }
 0xfdd   :  { %v803_v36 = vmul.f32 %v2629_v20, %v799_v33 }
 0xfdf   :  { %v804_v37 = vpack.c.bf16 %v803_v36, %v802_v34 }
 0xfe1   :  { %806 = vrot.lane.b32.xlu1 %v804_v37, %s2798_s3 }
0x1053   :  { %v807_v39 = vpop.permute.xlu1 %806 }
0x1054   :  { %2395 = vmatmul.mubr.msk.bf16.vlgmr.msra.gmra.mxu0 %vm219_vm3, %v807_v39 }
0x1055   :  { %2407 = vmatpush3.bf16.msra.mxu0 %v2526_v31  ;;  %2410 = vmatprep.mubr.msk.bf16.mxu0 %vm219_vm3, %v2933_v52  ;;  %v193_v52 = vadd.f32 %v2920_v13, %v3068_v14 }
0x1056   :  { %2408 = vmatprep.subr.bf16.mxu0 %v2527_v38 }
0x1059   :  { %2409 = vmatpush3.bf16.msra.mxu0 %v2527_v38 }
0x105a   :  { %2458 = vmatprep.subr.bf16.mxu0 %v2794_v1 }
0x105c   :  { %2411 = vmatmul.mubr.msk.bf16.vlgmr.msra.gmra.mxu0 %vm219_vm3, %v2974_v35  ;;  %v196_v35 = vadd.f32 %v2920_v13, %v3072_v16 }
0x105d   :  { %2414 = vmatprep.mubr.msk.bf16.mxu0 %vm219_vm3, %v2997_v17  ;;  %2459 = vmatpush3.bf16.msra.mxu0 %v3152_v10 }
0x105e   :  { %2460 = vmatprep.subr.bf16.mxu0 %v2794_v1 }
0x1061   :  { %2461 = vmatpush3.bf16.msra.mxu0 %v3159_v0 }
0x1062   :  { %2474 = vmatprep.subr.bf16.mxu0 %v2794_v1 }
0x1064   :  { %2415 = vmatmul.mubr.msk.bf16.gmra.mxu0 %vm219_vm3, %v3053_v5 }
0x1065   :  { %2418 = vmatprep.mubr.msk.bf16.mxu0 %vm219_vm3, %v3085_v43 }
0x106c   :  { %2419 = vmatmul.mubr.msk.bf16.gmra.mxu0 %vm219_vm3, %v807_v39 }
0x1114   :  { %v845_v40 = vpop.f32.mrf.mxu0 }
0x1115   :  { %v852_v41 = vadd.f32 %v845_v40, %v193_v52 }
0x1116   :  { %v2396_v42 = vpop.f32.mrf.mxu0 }
0x1117   :  { %2634 = vtanh.f32 %v852_v41  ;;  %v2191_v48 = vmul.f32 -1.442695, %v852_v41 }
0x1118   :  { %v848_v44 = vpop.f32.mrf.mxu0 }
0x1119   :  { %v853_v17 = vadd.f32 %v848_v44, %v196_v35 }
0x111a   :  { %v2397_v45 = vpop.f32.mrf.mxu0 }
0x111b   :  { %2636 = vtanh.f32 %v853_v17  ;;  %v2192_v14 = vmul.f32 -1.442695, %v853_v17 }
0x111c   :  { %2638 = vpow2.f32 %v2191_v48  ;;  %v3179_v18 = vpop.f32.mrf.mxu0 }
0x111d   :  { %2640 = vpow2.f32 %v2192_v14 }
0x111e   :  { %v1068_v20 = vpop.f32.mrf.mxu0 }
0x111f   :  { %v1069_v12 = vadd.f32 %v3194_v27, %v1068_v20 }
0x1120   :  { %v3187_v24 = vpop.f32.mrf.mxu0 }
0x1122   :  { %v1071_v29 = vpop.f32.mrf.mxu0 }
0x1123   :  { %v1072_v33 = vadd.f32 %v3194_v27, %v1071_v29 }
0x1124   :  { %v2635_v5 = vpop.eup %2634 }
0x1125   :  { %872 = vrot.lane.b32.xlu0 %v2635_v5, %s2797_s22 }
0x1128   :  { %v2637_v47 = vpop.eup %2636 }
0x1129   :  { %874 = vrot.lane.b32.xlu1 %v2637_v47, %s2797_s22  ;;  %v2639_v49 = vpop.eup %2638 }
0x112a   :  { %v860_v50 = vadd.f32 1.0, %v2639_v49  ;;  %v2641_v51 = vpop.eup %2640 }
0x112b   :  { %v861_v16 = vadd.f32 1.0, %v2641_v51 }
0x112c   :  { %2642 = vrcp.f32 %v860_v50 }
0x112d   :  { %2644 = vrcp.f32 %v861_v16 }
0x1139   :  { %v2643_v53 = vpop.eup %2642 }
0x113a   :  { %v2645_v56 = vpop.eup %2644  ;;  %v868_v57 = vmul.f32 %v2643_v53, %v3103_v25 }
0x113b   :  { %v869_v60 = vmul.f32 %v2645_v56, %v3106_v28 }
0x1197   :  { %v873_v54 = vpop.permute.xlu0 %872 }
0x1198   :  { %v878_v55 = vmul.f32 %v2643_v53, %v873_v54 }
0x119a   :  { %882 = vrot.lane.b32.xlu0 %v878_v55, %s2797_s22 }
0x119b   :  { %v875_v43 = vpop.permute.xlu1 %874 }
0x119c   :  { %v879_v46 = vmul.f32 %v2645_v56, %v875_v43 }
0x119e   :  { %884 = vrot.lane.b32.xlu1 %v879_v46, %s2797_s22 }
0x120c   :  { %v883_v58 = vpop.permute.xlu0 %882 }
0x120d   :  { %v3140_v59 = vadd.f32 %v883_v58, %v868_v57 }
0x120f   :  { %2646 = vtanh.f32 %v3140_v59 }
0x1210   :  { %v885_v3 = vpop.permute.xlu1 %884 }
0x1211   :  { %v3144_v61 = vadd.f32 %v885_v3, %v869_v60  ;;  %v1077_v60 = vadd.f32 %v3179_v18, %v3194_v27 }
0x1213   :  { %2648 = vtanh.f32 %v3144_v61 }
0x121c   :  { %v2647_v62 = vpop.eup %2646 }
0x121d   :  { %894 = vrot.lane.b32.xlu0 %v2647_v62, %s2797_s22 }
0x1220   :  { %v2649_v63 = vpop.eup %2648 }
0x1221   :  { %896 = vrot.lane.b32.xlu1 %v2649_v63, %s2797_s22 }
0x128f   :  { %v895_v2 = vpop.permute.xlu0 %894 }
0x1290   :  { %v900_v6 = vmul.f32 %v2643_v53, %v895_v2  ;;  %v1080_v2 = vadd.f32 %v3187_v24, %v3194_v27 }
0x1293   :  { %v897_v4 = vpop.permute.xlu1 %896 }
0x1294   :  { %v901_v7 = vmul.f32 %v2645_v56, %v897_v4 }
0x1296   :  { %v902_v8 = vpack.c.bf16 %v901_v7, %v900_v6 }
0x1298   :  { %904 = vrot.lane.b32.xlu0 %v902_v8, %s2798_s3 }
0x130a   :  { %v905_v9 = vpop.permute.xlu0 %904 }
0x130b   :  { %2403 = vmatmul.mubr.msk.bf16.vlgmr.msra.gmra.mxu1 %vm219_vm3, %v905_v9  ;;  %2422 = vmatprep.mubr.msk.bf16.mxu0 %vm219_vm3, %v905_v9 }
0x130c   :  { %2427 = vmatpush3.bf16.msra.mxu1 %v3152_v10  ;;  %2430 = vmatprep.mubr.msk.bf16.mxu1 %vm2795_vm1, %v2794_v1 }
0x130d   :  { %2428 = vmatprep.subr.bf16.mxu1 %v2794_v1 }
0x1310   :  { %2429 = vmatpush3.bf16.msra.mxu1 %v3159_v0 }
0x1311   :  { %2434 = vmatprep.subr.bf16.mxu1 %v2794_v1 }
0x1313   :  { %2431 = vmatmul.mubr.bf16.vlgmr.msra.gmra.mxu1 %v2796_v11 }
0x1314   :  { %2435 = vmatpush3.bf16.msra.mxu1 %v3152_v10  ;;  %2438 = vmatprep.mubr.msk.bf16.mxu1 %vm2795_vm1, %v2794_v1 }
0x1315   :  { %2436 = vmatprep.subr.bf16.mxu1 %v2794_v1 }
0x1318   :  { %2437 = vmatpush3.bf16.msra.mxu1 %v3159_v0 }
0x1319   :  { %2442 = vmatprep.subr.bf16.mxu1 %v2794_v1 }
0x13cb   :  { %v943_v21 = vpop.f32.mrf.mxu1 }
0x13cc   :  { %v3183_v22 = vadd.f32 %v943_v21, %v201_v19 }
0x13cd   :  { %v2404_v11 = vpop.f32.mrf.mxu1 }
0x13cf   :  { %v946_v25 = vpop.f32.mrf.mxu1 }
0x13d0   :  { %v3189_v26 = vadd.f32 %v946_v25, %v204_v23 }
0x13d1   :  { %v2405_v28 = vpop.f32.mrf.mxu1 }
0x13d3   :  { %v1177_v30 = vpop.f32.mrf.mxu1 }
0x13d4   :  { %v1184_v31 = vadd.f32 %v1177_v30, %v1069_v12 }
0x13d5   :  { %v2432_v32 = vpop.f32.mrf.mxu1 }
0x13d6   :  { %2650 = vtanh.f32 %v1184_v31  ;;  %v2209_v38 = vmul.f32 -1.442695, %v1184_v31 }
0x13d7   :  { %v1180_v13 = vpop.f32.mrf.mxu1 }
0x13d8   :  { %v1185_v15 = vadd.f32 %v1180_v13, %v1072_v33 }
0x13d9   :  { %v2433_v34 = vpop.f32.mrf.mxu1 }
0x13da   :  { %2652 = vtanh.f32 %v1185_v15  ;;  %v2210_v39 = vmul.f32 -1.442695, %v1185_v15 }
0x13db   :  { %2654 = vpow2.f32 %v2209_v38 }
0x13dc   :  { %2656 = vpow2.f32 %v2210_v39 }
0x13e3   :  { %v2651_v36 = vpop.eup %2650 }
0x13e4   :  { %1204 = vrot.lane.b32.xlu1 %v2651_v36, %s2797_s22 }
0x13e7   :  { %v2653_v37 = vpop.eup %2652 }
0x13e8   :  { %1206 = vrot.lane.b32.xlu0 %v2653_v37, %s2797_s22  ;;  %v2655_v52 = vpop.eup %2654 }
0x13e9   :  { %v1192_v40 = vadd.f32 1.0, %v2655_v52  ;;  %v2657_v41 = vpop.eup %2656 }
0x13ea   :  { %v1193_v42 = vadd.f32 1.0, %v2657_v41 }
0x13eb   :  { %2658 = vrcp.f32 %v1192_v40 }
0x13ec   :  { %2660 = vrcp.f32 %v1193_v42 }
0x13f8   :  { %v2659_v35 = vpop.eup %2658 }
0x13f9   :  { %v2661_v45 = vpop.eup %2660  ;;  %v1200_v48 = vmul.f32 0.0, %v2659_v35 }
0x13fa   :  { %v1201_v50 = vmul.f32 0.0, %v2661_v45 }
0x1456   :  { %v1205_v44 = vpop.permute.xlu1 %1204 }
0x1457   :  { %v1210_v17 = vmul.f32 %v2659_v35, %v1205_v44 }
0x1459   :  { %1214 = vrot.lane.b32.xlu1 %v1210_v17, %s2797_s22 }
0x145a   :  { %v1207_v5 = vpop.permute.xlu0 %1206 }
0x145b   :  { %v1211_v47 = vmul.f32 %v2661_v45, %v1207_v5 }
0x145d   :  { %1216 = vrot.lane.b32.xlu0 %v1211_v47, %s2797_s22 }
0x14cb   :  { %v1215_v14 = vpop.permute.xlu1 %1214 }
0x14cc   :  { %v1220_v49 = vadd.f32 %v1215_v14, %v1200_v48 }
0x14ce   :  { %2662 = vtanh.f32 %v1220_v49 }
0x14cf   :  { %v1217_v51 = vpop.permute.xlu0 %1216 }
0x14d0   :  { %v1221_v16 = vadd.f32 %v1217_v51, %v1201_v50 }
0x14d2   :  { %2664 = vtanh.f32 %v1221_v16 }
0x14db   :  { %v2663_v53 = vpop.eup %2662 }
0x14dc   :  { %1226 = vrot.lane.b32.xlu1 %v2663_v53, %s2797_s22 }
0x14df   :  { %v2665_v54 = vpop.eup %2664 }
0x14e0   :  { %1228 = vrot.lane.b32.xlu0 %v2665_v54, %s2797_s22 }
0x154e   :  { %v1227_v55 = vpop.permute.xlu1 %1226 }
0x154f   :  { %v1232_v43 = vmul.f32 %v2659_v35, %v1227_v55  ;;  %v3230_v35 = vpop.f32.mrf.mxu0 }
0x1551   :  { %v1084_v44 = vpop.f32.mrf.mxu0 }
0x1552   :  { %v1229_v56 = vpop.permute.xlu0 %1228 }
0x1553   :  { %v1233_v46 = vmul.f32 %v2661_v45, %v1229_v56  ;;  %v3232_v17 = vpop.f32.mrf.mxu0  ;;  %v1085_v45 = vadd.f32 %v3194_v27, %v1084_v44 }
0x1555   :  { %v1234_v57 = vpack.c.bf16 %v1233_v46, %v1232_v43  ;;  %v1087_v5 = vpop.f32.mrf.mxu0 }
0x1557   :  { %1236 = vrot.lane.b32.xlu1 %v1234_v57, %s2798_s3 }
0x15c9   :  { %v1237_v58 = vpop.permute.xlu1 %1236 }
0x15ca   :  { %2439 = vmatmul.mubr.msk.bf16.vlgmr.msra.gmra.mxu1 %vm219_vm3, %v1237_v58 }
0x15cb   :  { %2443 = vmatpush3.bf16.msra.mxu1 %v3152_v10  ;;  %2446 = vmatprep.mubr.msk.bf16.mxu1 %vm2795_vm1, %v2794_v1 }
0x15cc   :  { %2444 = vmatprep.subr.bf16.mxu1 %v2794_v1 }
0x15cf   :  { %2445 = vmatpush3.bf16.msra.mxu1 %v3159_v0 }
0x15d0   :  { %2450 = vmatprep.subr.bf16.mxu1 %v2794_v1 }
0x168a   :  { %v1275_v3 = vpop.f32.mrf.mxu1 }
0x168b   :  { %v1282_v62 = vadd.f32 %v1275_v3, %v1077_v60 }
0x168c   :  { %v2440_v63 = vpop.f32.mrf.mxu1 }
0x168d   :  { %2666 = vtanh.f32 %v1282_v62  ;;  %v2212_v19 = vmul.f32 -1.442695, %v1282_v62 }
0x168e   :  { %v1278_v4 = vpop.f32.mrf.mxu1 }
0x168f   :  { %v1283_v6 = vadd.f32 %v1278_v4, %v1080_v2 }
0x1690   :  { %v2441_v7 = vpop.f32.mrf.mxu1 }
0x1691   :  { %2668 = vtanh.f32 %v1283_v6  ;;  %v2213_v18 = vmul.f32 -1.442695, %v1283_v6 }
0x1692   :  { %2670 = vpow2.f32 %v2212_v19 }
0x1693   :  { %2672 = vpow2.f32 %v2213_v18 }
0x169a   :  { %v2667_v8 = vpop.eup %2666 }
0x169b   :  { %1302 = vrot.lane.b32.xlu0 %v2667_v8, %s2797_s22 }
0x169e   :  { %v2669_v9 = vpop.eup %2668 }
0x169f   :  { %1304 = vrot.lane.b32.xlu1 %v2669_v9, %s2797_s22  ;;  %v2671_v20 = vpop.eup %2670 }
0x16a0   :  { %v1290_v21 = vadd.f32 1.0, %v2671_v20  ;;  %v2673_v11 = vpop.eup %2672 }
0x16a1   :  { %v1291_v23 = vadd.f32 1.0, %v2673_v11 }
0x16a2   :  { %2674 = vrcp.f32 %v1290_v21 }
0x16a3   :  { %2676 = vrcp.f32 %v1291_v23 }
0x16af   :  { %v2675_v24 = vpop.eup %2674 }
0x16b0   :  { %v2677_v12 = vpop.eup %2676  ;;  %v1298_v31 = vmul.f32 %v2675_v24, %v1220_v49  ;;  %v1088_v49 = vadd.f32 %v3194_v27, %v1087_v5 }
0x16b1   :  { %v1299_v13 = vmul.f32 %v2677_v12, %v1221_v16 }
0x170d   :  { %v1303_v25 = vpop.permute.xlu0 %1302 }
0x170e   :  { %v1308_v28 = vmul.f32 %v2675_v24, %v1303_v25 }
0x1710   :  { %1312 = vrot.lane.b32.xlu0 %v1308_v28, %s2797_s22 }
0x1711   :  { %v1305_v29 = vpop.permute.xlu1 %1304 }
0x1712   :  { %v1309_v30 = vmul.f32 %v2677_v12, %v1305_v29 }
0x1714   :  { %1314 = vrot.lane.b32.xlu1 %v1309_v30, %s2797_s22 }
0x1782   :  { %v1313_v32 = vpop.permute.xlu0 %1312 }
0x1783   :  { %v1318_v33 = vadd.f32 %v1313_v32, %v1298_v31  ;;  %v2194_v31 = vmul.f32 -1.442695, %v3183_v22  ;;  %v2195_v32 = vmul.f32 -1.442695, %v3189_v26 }
0x1785   :  { %2678 = vtanh.f32 %v1318_v33 }
0x1786   :  { %v1315_v15 = vpop.permute.xlu1 %1314 }
0x1787   :  { %v1319_v34 = vadd.f32 %v1315_v15, %v1299_v13  ;;  %v1093_v13 = vadd.f32 %v3230_v35, %v3194_v27 }
0x1789   :  { %2680 = vtanh.f32 %v1319_v34 }
0x1792   :  { %v2679_v36 = vpop.eup %2678 }
0x1793   :  { %1324 = vrot.lane.b32.xlu0 %v2679_v36, %s2797_s22 }
0x1796   :  { %v2681_v37 = vpop.eup %2680 }
0x1797   :  { %1326 = vrot.lane.b32.xlu1 %v2681_v37, %s2797_s22 }
0x1805   :  { %v1325_v38 = vpop.permute.xlu0 %1324 }
0x1806   :  { %v1330_v52 = vmul.f32 %v2675_v24, %v1325_v38 }
0x1809   :  { %v1327_v39 = vpop.permute.xlu1 %1326 }
0x180a   :  { %v1331_v40 = vmul.f32 %v2677_v12, %v1327_v39  ;;  %v1096_v39 = vadd.f32 %v3232_v17, %v3194_v27 }
0x180c   :  { %v1332_v41 = vpack.c.bf16 %v1331_v40, %v1330_v52 }
0x180e   :  { %1334 = vrot.lane.b32.xlu0 %v1332_v41, %s2798_s3 }
0x1880   :  { %v1335_v42 = vpop.permute.xlu0 %1334 }
0x1881   :  { %2447 = vmatmul.mubr.msk.bf16.vlgmr.msra.gmra.mxu1 %vm219_vm3, %v1335_v42 }
0x1882   :  { %2451 = vmatpush3.bf16.msra.mxu1 %v3152_v10  ;;  %2454 = vmatprep.mubr.msk.bf16.mxu1 %vm2795_vm1, %v2794_v1 }
0x1883   :  { %2452 = vmatprep.subr.bf16.mxu1 %v2794_v1 }
0x1886   :  { %2453 = vmatpush3.bf16.msra.mxu1 %v3159_v0 }
0x1887   :  { %2466 = vmatprep.subr.bf16.mxu1 %v2794_v1 }
0x1941   :  { %v1373_v47 = vpop.f32.mrf.mxu1 }
0x1942   :  { %v1380_v48 = vadd.f32 %v1373_v47, %v1085_v45 }
0x1943   :  { %v2448_v14 = vpop.f32.mrf.mxu1 }
0x1944   :  { %2682 = vtanh.f32 %v1380_v48  ;;  %v2215_v55 = vmul.f32 -1.442695, %v1380_v48 }
0x1945   :  { %v1376_v50 = vpop.f32.mrf.mxu1 }
0x1946   :  { %v1381_v51 = vadd.f32 %v1376_v50, %v1088_v49 }
0x1947   :  { %v2449_v16 = vpop.f32.mrf.mxu1 }
0x1948   :  { %2684 = vtanh.f32 %v1381_v51  ;;  %v2216_v56 = vmul.f32 -1.442695, %v1381_v51 }
0x1949   :  { %2686 = vpow2.f32 %v2215_v55 }
0x194a   :  { %2688 = vpow2.f32 %v2216_v56 }
0x1951   :  { %v2683_v53 = vpop.eup %2682 }
0x1952   :  { %1400 = vrot.lane.b32.xlu1 %v2683_v53, %s2797_s22 }
0x1955   :  { %v2685_v54 = vpop.eup %2684 }
0x1956   :  { %1402 = vrot.lane.b32.xlu0 %v2685_v54, %s2797_s22  ;;  %v2687_v43 = vpop.eup %2686 }
0x1957   :  { %v1388_v46 = vadd.f32 1.0, %v2687_v43  ;;  %v2689_v57 = vpop.eup %2688 }
0x1958   :  { %v1389_v58 = vadd.f32 1.0, %v2689_v57 }
0x1959   :  { %2690 = vrcp.f32 %v1388_v46 }
0x195a   :  { %2692 = vrcp.f32 %v1389_v58 }
0x1966   :  { %v2691_v60 = vpop.eup %2690 }
0x1967   :  { %v2693_v63 = vpop.eup %2692  ;;  %v1396_v6 = vmul.f32 %v2691_v60, %v1318_v33 }
0x1968   :  { %v1397_v9 = vmul.f32 %v2693_v63, %v1319_v34 }
0x19c4   :  { %v1401_v3 = vpop.permute.xlu1 %1400 }
0x19c5   :  { %v1406_v62 = vmul.f32 %v2691_v60, %v1401_v3 }
0x19c7   :  { %1410 = vrot.lane.b32.xlu1 %v1406_v62, %s2797_s22 }
0x19c8   :  { %v1403_v2 = vpop.permute.xlu0 %1402 }
0x19c9   :  { %v1407_v4 = vmul.f32 %v2693_v63, %v1403_v2 }
0x19cb   :  { %1412 = vrot.lane.b32.xlu0 %v1407_v4, %s2797_s22 }
0x1a39   :  { %v1411_v7 = vpop.permute.xlu1 %1410 }
0x1a3a   :  { %v3240_v8 = vadd.f32 %v1411_v7, %v1396_v6 }
0x1a3c   :  { %2694 = vtanh.f32 %v3240_v8 }
0x1a3d   :  { %v1413_v19 = vpop.permute.xlu0 %1412 }
0x1a3e   :  { %v3243_v18 = vadd.f32 %v1413_v19, %v1397_v9 }
0x1a40   :  { %2696 = vtanh.f32 %v3243_v18 }
0x1a41   :  { %2698 = vtanh.f32 %v3183_v22 }
0x1a42   :  { %2700 = vtanh.f32 %v3189_v26 }
0x1a43   :  { %2702 = vpow2.f32 %v2194_v31 }
0x1a44   :  { %2704 = vpow2.f32 %v2195_v32 }
0x1a49   :  { %v2695_v20 = vpop.eup %2694 }
0x1a4a   :  { %1422 = vrot.lane.b32.xlu1 %v2695_v20, %s2797_s22 }
0x1a4d   :  { %v2697_v21 = vpop.eup %2696 }
0x1a4e   :  { %1424 = vrot.lane.b32.xlu0 %v2697_v21, %s2797_s22  ;;  %v2699_v11 = vpop.eup %2698 }
0x1a4f   :  { %v2701_v29 = vpop.eup %2700 }
0x1a50   :  { %v2703_v33 = vpop.eup %2702 }
0x1a51   :  { %v958_v34 = vadd.f32 1.0, %v2703_v33  ;;  %v2705_v37 = vpop.eup %2704  ;;  %v3298_v33 = vpop.f32.mrf.mxu0 }
0x1a52   :  { %970 = vrot.lane.b32.xlu0 %v2699_v11, %s2797_s22  ;;  %v959_v22 = vadd.f32 1.0, %v2705_v37 }
0x1abc   :  { %v1423_v23 = vpop.permute.xlu1 %1422 }
0x1abd   :  { %v1428_v25 = vmul.f32 %v2691_v60, %v1423_v23 }
0x1ac0   :  { %v1425_v24 = vpop.permute.xlu0 %1424 }
0x1ac1   :  { %v1429_v28 = vmul.f32 %v2693_v63, %v1425_v24 }
0x1ac3   :  { %v1430_v12 = vpack.c.bf16 %v1429_v28, %v1428_v25 }
0x1ac4   :  { %v971_v42 = vpop.permute.xlu0 %970 }
0x1ac5   :  { %1432 = vrot.lane.b32.xlu1 %v1430_v12, %s2798_s3 }
0x1ac9   :  { %972 = vrot.lane.b32.xlu1 %v2701_v29, %s2797_s22 }
0x1b37   :  { %v1433_v30 = vpop.permute.xlu1 %1432 }
0x1b38   :  { %2455 = vmatmul.mubr.msk.bf16.vlgmr.msra.gmra.mxu1 %vm219_vm3, %v1433_v30 }
0x1b39   :  { %2467 = vmatpush3.bf16.msra.mxu1 %v3152_v10  ;;  %2470 = vmatprep.mubr.msk.bf16.mxu1 %vm2795_vm1, %v2794_v1 }
0x1b3a   :  { %2468 = vmatprep.subr.bf16.mxu1 %v2794_v1 }
0x1b3b   :  { %v973_v5 = vpop.permute.xlu1 %972 }
0x1b3d   :  { %2469 = vmatpush3.bf16.msra.mxu1 %v3159_v0 }
0x1b3e   :  { %2482 = vmatprep.subr.bf16.mxu1 %v2794_v1 }
0x1bf8   :  { %v1471_v15 = vpop.f32.mrf.mxu1 }
0x1bf9   :  { %v1478_v36 = vadd.f32 %v1471_v15, %v1093_v13  ;;  %v1100_v13 = vpop.f32.mrf.mxu0 }
0x1bfa   :  { %v2456_v38 = vpop.f32.mrf.mxu1 }
0x1bfb   :  { %2706 = vtanh.f32 %v1478_v36  ;;  %v2218_v48 = vmul.f32 -1.442695, %v1478_v36  ;;  %v3300_v15 = vpop.f32.mrf.mxu0 }
0x1bfc   :  { %v1474_v52 = vpop.f32.mrf.mxu1  ;;  %2708 = vrcp.f32 %v958_v34 }
0x1bfd   :  { %v1479_v40 = vadd.f32 %v1474_v52, %v1096_v39  ;;  %v1103_v34 = vpop.f32.mrf.mxu0  ;;  %v1101_v52 = vadd.f32 %v3194_v27, %v1100_v13 }
0x1bfe   :  { %v2457_v41 = vpop.f32.mrf.mxu1 }
0x1bff   :  { %2710 = vtanh.f32 %v1479_v40  ;;  %v2219_v14 = vmul.f32 -1.442695, %v1479_v40 }
0x1c00   :  { %2712 = vrcp.f32 %v959_v22 }
0x1c01   :  { %2714 = vpow2.f32 %v2218_v48 }
0x1c02   :  { %2716 = vpow2.f32 %v2219_v14 }
0x1c08   :  { %v2707_v26 = vpop.eup %2706 }
0x1c09   :  { %1498 = vrot.lane.b32.xlu0 %v2707_v26, %s2797_s22  ;;  %v2709_v35 = vpop.eup %2708  ;;  %v1104_v26 = vadd.f32 %v3194_v27, %v1103_v34 }
0x1c0a   :  { %v976_v44 = vmul.f32 %v2709_v35, %v971_v42  ;;  %v966_v56 = vmul.f32 %v2709_v35, %v3140_v59 }
0x1c0c   :  { %v2711_v45 = vpop.eup %2710 }
0x1c0d   :  { %980 = vrot.lane.b32.xlu0 %v976_v44, %s2797_s22  ;;  %1500 = vrot.lane.b32.xlu1 %v2711_v45, %s2797_s22  ;;  %v2713_v17 = vpop.eup %2712 }
0x1c0e   :  { %v977_v47 = vmul.f32 %v2713_v17, %v973_v5  ;;  %v2715_v49 = vpop.eup %2714  ;;  %v967_v3 = vmul.f32 %v2713_v17, %v3144_v61 }
0x1c0f   :  { %v1486_v50 = vadd.f32 1.0, %v2715_v49  ;;  %v2717_v51 = vpop.eup %2716 }
0x1c10   :  { %v1487_v16 = vadd.f32 1.0, %v2717_v51 }
0x1c11   :  { %982 = vrot.lane.b32.xlu1 %v977_v47, %s2797_s22  ;;  %2718 = vrcp.f32 %v1486_v50 }
0x1c12   :  { %2720 = vrcp.f32 %v1487_v16 }
0x1c1e   :  { %v2719_v53 = vpop.eup %2718 }
0x1c1f   :  { %v2721_v43 = vpop.eup %2720  ;;  %v1494_v59 = vmul.f32 %v2719_v53, %v3240_v8 }
0x1c20   :  { %v1495_v9 = vmul.f32 %v2721_v43, %v3243_v18 }
0x1c7b   :  { %v1499_v54 = vpop.permute.xlu0 %1498 }
0x1c7c   :  { %v1504_v55 = vmul.f32 %v2719_v53, %v1499_v54 }
0x1c7e   :  { %1508 = vrot.lane.b32.xlu0 %v1504_v55, %s2797_s22 }
0x1c7f   :  { %v981_v46 = vpop.permute.xlu0 %980  ;;  %v1501_v57 = vpop.permute.xlu1 %1500 }
0x1c80   :  { %v986_v58 = vadd.f32 %v981_v46, %v966_v56  ;;  %v1505_v60 = vmul.f32 %v2721_v43, %v1501_v57 }
0x1c82   :  { %2722 = vtanh.f32 %v986_v58  ;;  %1510 = vrot.lane.b32.xlu1 %v1505_v60, %s2797_s22 }
0x1c83   :  { %v983_v62 = vpop.permute.xlu1 %982 }
0x1c84   :  { %v987_v63 = vadd.f32 %v983_v62, %v967_v3 }
0x1c86   :  { %2724 = vtanh.f32 %v987_v63 }
0x1c8f   :  { %v2723_v2 = vpop.eup %2722 }
0x1c90   :  { %992 = vrot.lane.b32.xlu0 %v2723_v2, %s2797_s22 }
0x1c93   :  { %v2725_v4 = vpop.eup %2724 }
0x1c94   :  { %994 = vrot.lane.b32.xlu1 %v2725_v4, %s2797_s22 }
0x1cf0   :  { %v1509_v6 = vpop.permute.xlu0 %1508 }
0x1cf1   :  { %v3277_v7 = vadd.f32 %v1509_v6, %v1494_v59 }
0x1cf3   :  { %2726 = vtanh.f32 %v3277_v7 }
0x1cf4   :  { %v1511_v19 = vpop.permute.xlu1 %1510 }
0x1cf5   :  { %v3281_v61 = vadd.f32 %v1511_v19, %v1495_v9  ;;  %v1109_v19 = vadd.f32 %v3298_v33, %v3194_v27 }
0x1cf7   :  { %2728 = vtanh.f32 %v3281_v61 }
0x1d00   :  { %v2727_v20 = vpop.eup %2726 }
0x1d01   :  { %1520 = vrot.lane.b32.xlu0 %v2727_v20, %s2797_s22 }
0x1d02   :  { %v993_v11 = vpop.permute.xlu0 %992 }
0x1d03   :  { %v998_v23 = vmul.f32 %v2709_v35, %v993_v11  ;;  %v1112_v11 = vadd.f32 %v3300_v15, %v3194_v27 }
0x1d04   :  { %v2729_v21 = vpop.eup %2728 }
0x1d05   :  { %1522 = vrot.lane.b32.xlu1 %v2729_v21, %s2797_s22 }
0x1d06   :  { %v995_v8 = vpop.permute.xlu1 %994 }
0x1d07   :  { %v999_v24 = vmul.f32 %v2713_v17, %v995_v8 }
0x1d09   :  { %v1009_v25 = vpack.c.bf16 %v999_v24, %v998_v23 }
0x1d0b   :  { %1017 = vrot.lane.b32.xlu0 %v1009_v25, %s2798_s3 }
0x1d73   :  { %v1521_v28 = vpop.permute.xlu0 %1520 }
0x1d74   :  { %v1526_v12 = vmul.f32 %v2719_v53, %v1521_v28 }
0x1d77   :  { %v1523_v18 = vpop.permute.xlu1 %1522 }
0x1d78   :  { %v1527_v29 = vmul.f32 %v2721_v43, %v1523_v18 }
0x1d7a   :  { %v1528_v30 = vpack.c.bf16 %v1527_v29, %v1526_v12 }
0x1d7c   :  { %1530 = vrot.lane.b32.xlu1 %v1528_v30, %s2798_s3 }
0x1d7d   :  { %v1018_v31 = vpop.permute.xlu0 %1017 }
0x1d7e   :  { %2423 = vmatmul.mubr.msk.bf16.gmra.mxu0 %vm219_vm3, %v1018_v31 }
0x1d7f   :  { %2462 = vmatprep.mubr.msk.bf16.mxu0 %vm2795_vm1, %v2794_v1 }
0x1dee   :  { %v1531_v32 = vpop.permute.xlu1 %1530 }
0x1def   :  { %2463 = vmatmul.mubr.msk.bf16.vlgmr.msra.gmra.mxu0 %vm219_vm3, %v1531_v32 }
0x1df0   :  { %2475 = vmatpush3.bf16.msra.mxu0 %v3152_v10  ;;  %2478 = vmatprep.mubr.msk.bf16.mxu0 %vm2795_vm1, %v2794_v1 }
0x1df1   :  { %2476 = vmatprep.subr.bf16.mxu0 %v2794_v1 }
0x1df4   :  { %2477 = vmatpush3.bf16.msra.mxu0 %v3159_v0 }
0x1df5   :  { %2490 = vmatprep.subr.bf16.mxu0 %v2794_v1 }
0x1e3e   :  { %v3302_v36 = vpop.f32.mrf.mxu0 }
0x1e40   :  { %v3304_v37 = vpop.f32.mrf.mxu0 }
0x1e42   :  { %v3306_v38 = vpop.f32.mrf.mxu0 }
0x1e44   :  { %v3308_v39 = vpop.f32.mrf.mxu0 }
0x1eaf   :  { %v1569_v22 = vpop.f32.mrf.mxu0 }
0x1eb0   :  { %v1576_v40 = vadd.f32 %v1569_v22, %v1101_v52 }
0x1eb1   :  { %v2464_v41 = vpop.f32.mrf.mxu0 }
0x1eb2   :  { %2730 = vtanh.f32 %v1576_v40  ;;  %v2221_v17 = vmul.f32 -1.442695, %v1576_v40 }
0x1eb3   :  { %v1572_v42 = vpop.f32.mrf.mxu0 }
0x1eb4   :  { %v1577_v35 = vadd.f32 %v1572_v42, %v1104_v26 }
0x1eb5   :  { %v2465_v44 = vpop.f32.mrf.mxu0 }
0x1eb6   :  { %2732 = vtanh.f32 %v1577_v35  ;;  %v2222_v47 = vmul.f32 -1.442695, %v1577_v35 }
0x1eb7   :  { %2734 = vpow2.f32 %v2221_v17 }
0x1eb8   :  { %2736 = vpow2.f32 %v2222_v47 }
0x1ebf   :  { %v2731_v45 = vpop.eup %2730 }
0x1ec0   :  { %1596 = vrot.lane.b32.xlu0 %v2731_v45, %s2797_s22 }
0x1ec3   :  { %v2733_v5 = vpop.eup %2732 }
0x1ec4   :  { %1598 = vrot.lane.b32.xlu1 %v2733_v5, %s2797_s22  ;;  %v2735_v48 = vpop.eup %2734 }
0x1ec5   :  { %v1584_v14 = vadd.f32 1.0, %v2735_v48  ;;  %v2737_v49 = vpop.eup %2736 }
0x1ec6   :  { %v1585_v50 = vadd.f32 1.0, %v2737_v49  ;;  %v1117_v49 = vadd.f32 %v3194_v27, %v3304_v37 }
0x1ec7   :  { %2738 = vrcp.f32 %v1584_v14 }
0x1ec8   :  { %2740 = vrcp.f32 %v1585_v50 }
0x1ed4   :  { %v2739_v51 = vpop.eup %2738 }
0x1ed5   :  { %v2741_v54 = vpop.eup %2740  ;;  %v1592_v43 = vmul.f32 %v2739_v51, %v3277_v7 }
0x1ed6   :  { %v1593_v58 = vmul.f32 %v2741_v54, %v3281_v61 }
0x1f32   :  { %v1597_v16 = vpop.permute.xlu0 %1596 }
0x1f33   :  { %v1602_v53 = vmul.f32 %v2739_v51, %v1597_v16 }
0x1f35   :  { %1606 = vrot.lane.b32.xlu0 %v1602_v53, %s2797_s22  ;;  %v1120_v53 = vadd.f32 %v3194_v27, %v3308_v39 }
0x1f36   :  { %v1599_v55 = vpop.permute.xlu1 %1598 }
0x1f37   :  { %v1603_v56 = vmul.f32 %v2741_v54, %v1599_v55 }
0x1f39   :  { %1608 = vrot.lane.b32.xlu1 %v1603_v56, %s2797_s22 }
0x1fa7   :  { %v1607_v46 = vpop.permute.xlu0 %1606 }
0x1fa8   :  { %v1612_v57 = vadd.f32 %v1607_v46, %v1592_v43 }
0x1faa   :  { %2742 = vtanh.f32 %v1612_v57 }
0x1fab   :  { %v1609_v60 = vpop.permute.xlu1 %1608 }
0x1fac   :  { %v1613_v3 = vadd.f32 %v1609_v60, %v1593_v58 }
0x1fae   :  { %2744 = vtanh.f32 %v1613_v3 }
0x1fb7   :  { %v2743_v62 = vpop.eup %2742 }
0x1fb8   :  { %1618 = vrot.lane.b32.xlu0 %v2743_v62, %s2797_s22 }
0x1fbb   :  { %v2745_v63 = vpop.eup %2744 }
0x1fbc   :  { %1620 = vrot.lane.b32.xlu1 %v2745_v63, %s2797_s22 }
0x202a   :  { %v1619_v2 = vpop.permute.xlu0 %1618 }
0x202b   :  { %v1624_v59 = vmul.f32 %v2739_v51, %v1619_v2 }
0x202e   :  { %v1621_v4 = vpop.permute.xlu1 %1620 }
0x202f   :  { %v1625_v6 = vmul.f32 %v2741_v54, %v1621_v4 }
0x2031   :  { %v1626_v9 = vpack.c.bf16 %v1625_v6, %v1624_v59 }
0x2033   :  { %1628 = vrot.lane.b32.xlu0 %v1626_v9, %s2798_s3 }
0x20a5   :  { %v1629_v7 = vpop.permute.xlu0 %1628 }
0x20a6   :  { %2471 = vmatmul.mubr.msk.bf16.vlgmr.msra.gmra.mxu1 %vm219_vm3, %v1629_v7 }
0x20a7   :  { %2483 = vmatpush3.bf16.msra.mxu1 %v3152_v10  ;;  %2486 = vmatprep.mubr.msk.bf16.mxu1 %vm2795_vm1, %v2794_v1 }
0x20a8   :  { %2484 = vmatprep.subr.bf16.mxu1 %v2794_v1 }
0x20ab   :  { %2485 = vmatpush3.bf16.msra.mxu1 %v3159_v0 }
0x20ac   :  { %2498 = vmatprep.subr.bf16.mxu1 %v2794_v1 }
0x2166   :  { %v1667_v61 = vpop.f32.mrf.mxu1 }
0x2167   :  { %v1674_v20 = vadd.f32 %v1667_v61, %v1109_v19 }
0x2168   :  { %v2472_v21 = vpop.f32.mrf.mxu1 }
0x2169   :  { %2746 = vtanh.f32 %v1674_v20  ;;  %v2224_v25 = vmul.f32 -1.442695, %v1674_v20 }
0x216a   :  { %v1670_v10 = vpop.f32.mrf.mxu1 }
0x216b   :  { %v1675_v8 = vadd.f32 %v1670_v10, %v1112_v11 }
0x216c   :  { %v2473_v23 = vpop.f32.mrf.mxu1 }
0x216d   :  { %2748 = vtanh.f32 %v1675_v8  ;;  %v2225_v28 = vmul.f32 -1.442695, %v1675_v8 }
0x216e   :  { %2750 = vpow2.f32 %v2224_v25 }
0x216f   :  { %2752 = vpow2.f32 %v2225_v28 }
0x2176   :  { %v2747_v24 = vpop.eup %2746 }
0x2177   :  { %1694 = vrot.lane.b32.xlu1 %v2747_v24, %s2797_s22 }
0x217a   :  { %v2749_v0 = vpop.eup %2748 }
0x217b   :  { %1696 = vrot.lane.b32.xlu0 %v2749_v0, %s2797_s22  ;;  %v2751_v18 = vpop.eup %2750 }
0x217c   :  { %v1682_v12 = vadd.f32 1.0, %v2751_v18  ;;  %v2753_v29 = vpop.eup %2752  ;;  %v1125_v18 = vadd.f32 %v3302_v36, %v3194_v27 }
0x217d   :  { %v1683_v30 = vadd.f32 1.0, %v2753_v29 }
0x217e   :  { %2754 = vrcp.f32 %v1682_v12 }
0x217f   :  { %2756 = vrcp.f32 %v1683_v30 }
0x218b   :  { %v2755_v31 = vpop.eup %2754 }
0x218c   :  { %v2757_v13 = vpop.eup %2756  ;;  %v1690_v52 = vmul.f32 %v2755_v31, %v1612_v57 }
0x218d   :  { %v1691_v41 = vmul.f32 %v2757_v13, %v1613_v3 }
0x21e9   :  { %v1695_v32 = vpop.permute.xlu1 %1694 }
0x21ea   :  { %v1700_v33 = vmul.f32 %v2755_v31, %v1695_v32 }
0x21ec   :  { %1704 = vrot.lane.b32.xlu1 %v1700_v33, %s2797_s22 }
0x21ed   :  { %v1697_v15 = vpop.permute.xlu0 %1696 }
0x21ee   :  { %v1701_v34 = vmul.f32 %v2757_v13, %v1697_v15 }
0x21f0   :  { %1706 = vrot.lane.b32.xlu0 %v1701_v34, %s2797_s22 }
0x225e   :  { %v1705_v22 = vpop.permute.xlu1 %1704 }
0x225f   :  { %v1710_v40 = vadd.f32 %v1705_v22, %v1690_v52 }
0x2261   :  { %2758 = vtanh.f32 %v1710_v40 }
0x2262   :  { %v1707_v26 = vpop.permute.xlu0 %1706 }
0x2263   :  { %v1711_v42 = vadd.f32 %v1707_v26, %v1691_v41 }
0x2265   :  { %2760 = vtanh.f32 %v1711_v42 }
0x226e   :  { %v2759_v35 = vpop.eup %2758 }
0x226f   :  { %1716 = vrot.lane.b32.xlu1 %v2759_v35, %s2797_s22 }
0x2272   :  { %v2761_v44 = vpop.eup %2760 }
0x2273   :  { %1718 = vrot.lane.b32.xlu0 %v2761_v44, %s2797_s22 }
0x22e1   :  { %v1717_v45 = vpop.permute.xlu1 %1716 }
0x22e2   :  { %v1722_v17 = vmul.f32 %v2755_v31, %v1717_v45  ;;  %v1128_v31 = vadd.f32 %v3306_v38, %v3194_v27 }
0x22e5   :  { %v1719_v5 = vpop.permute.xlu0 %1718 }
0x22e6   :  { %v1723_v47 = vmul.f32 %v2757_v13, %v1719_v5 }
0x22e8   :  { %v1724_v48 = vpack.c.bf16 %v1723_v47, %v1722_v17 }
0x22ea   :  { %1726 = vrot.lane.b32.xlu1 %v1724_v48, %s2798_s3 }
0x235c   :  { %v1727_v14 = vpop.permute.xlu1 %1726 }
0x235d   :  { %2479 = vmatmul.mubr.msk.bf16.vlgmr.msra.gmra.mxu0 %vm219_vm3, %v1727_v14 }
0x235e   :  { %2494 = vmatprep.mubr.msk.bf16.mxu0 %vm2795_vm1, %v2794_v1 }
0x241d   :  { %v1765_v50 = vpop.f32.mrf.mxu0 }
0x241e   :  { %v1772_v51 = vadd.f32 %v1765_v50, %v1117_v49  ;;  %v2530_v50 = vld [vmem:[%s3423_s7 + $0x8] sm:$0xff]  }
0x241f   :  { %v2480_v16 = vpop.f32.mrf.mxu0  ;;  %2491 = vmatpush3.bf16.msra.mxu0 %v2530_v50 }
0x2420   :  { %2762 = vtanh.f32 %v1772_v51  ;;  %v2227_v57 = vmul.f32 -1.442695, %v1772_v51  ;;  %v2531_v51 = vld [vmem:[%s3423_s7] sm:$0xff]   ;;  %2492 = vmatprep.subr.bf16.mxu0 %v2794_v1 }
0x2421   :  { %v1768_v54 = vpop.f32.mrf.mxu0 }
0x2422   :  { %v1773_v55 = vadd.f32 %v1768_v54, %v1120_v53  ;;  %v2532_v54 = vld [vmem:[%s3424_s9 + $0x18] sm:$0xff]  }
0x2423   :  { %v2481_v56 = vpop.f32.mrf.mxu0  ;;  %2493 = vmatpush3.bf16.msra.mxu0 %v2531_v51 }
0x2424   :  { %2764 = vtanh.f32 %v1773_v55  ;;  %v2228_v37 = vmul.f32 -1.442695, %v1773_v55  ;;  %2510 = vmatprep.subr.bf16.mxu0 %v2794_v1 }
0x2425   :  { %2766 = vpow2.f32 %v2227_v57 }
0x2426   :  { %2768 = vpow2.f32 %v2228_v37 }
0x242d   :  { %v2763_v43 = vpop.eup %2762 }
0x242e   :  { %1792 = vrot.lane.b32.xlu0 %v2763_v43, %s2797_s22 }
0x2431   :  { %v2765_v46 = vpop.eup %2764 }
0x2432   :  { %1794 = vrot.lane.b32.xlu1 %v2765_v46, %s2797_s22  ;;  %v2767_v58 = vpop.eup %2766 }
0x2433   :  { %v1780_v60 = vadd.f32 1.0, %v2767_v58  ;;  %v2769_v3 = vpop.eup %2768  ;;  %v2533_v58 = vld [vmem:[%s3424_s9 + $0x10] sm:$0xff]  }
0x2434   :  { %v1781_v39 = vadd.f32 1.0, %v2769_v3  ;;  %v2535_v3 = vld [vmem:[%s3424_s9] sm:$0xff]  }
0x2435   :  { %2770 = vrcp.f32 %v1780_v60  ;;  %v2534_v60 = vld [vmem:[%s3424_s9 + $0x8] sm:$0xff]  }
0x2436   :  { %2772 = vrcp.f32 %v1781_v39  ;;  %v2232_v39 = vld [vmem:[%s3425_s8] ss:$0 sm:$0xff] }
0x2442   :  { %v2771_v62 = vpop.eup %2770 }
0x2443   :  { %v2773_v4 = vpop.eup %2772  ;;  %v1788_v9 = vmul.f32 %v2771_v62, %v1710_v40 }
0x2444   :  { %v1789_v61 = vmul.f32 %v2773_v4, %v1711_v42 }
0x24a0   :  { %v1793_v63 = vpop.permute.xlu0 %1792 }
0x24a1   :  { %v1798_v2 = vmul.f32 %v2771_v62, %v1793_v63 }
0x24a3   :  { %1802 = vrot.lane.b32.xlu0 %v1798_v2, %s2797_s22 }
0x24a4   :  { %v1795_v59 = vpop.permute.xlu1 %1794 }
0x24a5   :  { %v1799_v6 = vmul.f32 %v2773_v4, %v1795_v59 }
0x24a7   :  { %1804 = vrot.lane.b32.xlu1 %v1799_v6, %s2797_s22 }
0x2515   :  { %v1803_v7 = vpop.permute.xlu0 %1802 }
0x2516   :  { %v1808_v19 = vadd.f32 %v1803_v7, %v1788_v9 }
0x2518   :  { %2774 = vtanh.f32 %v1808_v19 }
0x2519   :  { %v1805_v20 = vpop.permute.xlu1 %1804 }
0x251a   :  { %v1809_v21 = vadd.f32 %v1805_v20, %v1789_v61 }
0x251c   :  { %2776 = vtanh.f32 %v1809_v21 }
0x2525   :  { %v2775_v11 = vpop.eup %2774 }
0x2526   :  { %1814 = vrot.lane.b32.xlu0 %v2775_v11, %s2797_s22  ;;  %v2537_v11 = vld [vmem:[%s3426_s11] sm:$0xff]  }
0x2529   :  { %v2777_v10 = vpop.eup %2776 }
0x252a   :  { %1816 = vrot.lane.b32.xlu1 %v2777_v10, %s2797_s22  ;;  %v2236_v10 = vld [vmem:[%s3427_s10] ss:$0 sm:$0xff] }
0x2598   :  { %v1815_v8 = vpop.permute.xlu0 %1814 }
0x2599   :  { %v1820_v24 = vmul.f32 %v2771_v62, %v1815_v8 }
0x259c   :  { %v1817_v23 = vpop.permute.xlu1 %1816 }
0x259d   :  { %v1821_v0 = vmul.f32 %v2773_v4, %v1817_v23 }
0x259f   :  { %v1822_v25 = vpack.c.bf16 %v1821_v0, %v1820_v24 }
0x25a1   :  { %1824 = vrot.lane.b32.xlu0 %v1822_v25, %s2798_s3 }
0x2613   :  { %v1825_v28 = vpop.permute.xlu0 %1824 }
0x2614   :  { %2487 = vmatmul.mubr.msk.bf16.vlgmr.msra.gmra.mxu1 %vm219_vm3, %v1825_v28 }
0x2615   :  { %2506 = vmatprep.mubr.msk.bf16.mxu1 %vm2795_vm1, %v2794_v1  ;;  %2499 = vmatpush3.bf16.msra.mxu1 %v2532_v54 }
0x2616   :  { %2500 = vmatprep.subr.bf16.mxu1 %v2794_v1 }
0x2619   :  { %2501 = vmatpush3.bf16.msra.mxu1 %v2533_v58 }
0x261a   :  { %2502 = vmatprep.subr.bf16.mxu1 %v2794_v1 }
0x261d   :  { %2503 = vmatpush3.bf16.msra.mxu1 %v2534_v60 }
0x261e   :  { %2504 = vmatprep.subr.bf16.mxu1 %v2794_v1 }
0x2621   :  { %2505 = vmatpush3.bf16.msra.mxu1 %v2535_v3 }
0x26d4   :  { %v1863_v12 = vpop.f32.mrf.mxu1 }
0x26d5   :  { %v1870_v29 = vadd.f32 %v1863_v12, %v1125_v18 }
0x26d6   :  { %v2488_v30 = vpop.f32.mrf.mxu1 }
0x26d7   :  { %2778 = vtanh.f32 %v1870_v29  ;;  %v2230_v52 = vmul.f32 -1.442695, %v1870_v29 }
0x26d8   :  { %v1866_v32 = vpop.f32.mrf.mxu1 }
0x26d9   :  { %v1871_v33 = vadd.f32 %v1866_v32, %v1128_v31  ;;  %v2242_v31 = vld [vmem:[%s3428_s12] ss:$0 sm:$0xff] }
0x26da   :  { %v2489_v13 = vpop.f32.mrf.mxu1 }
0x26db   :  { %2780 = vtanh.f32 %v1871_v33  ;;  %v2231_v36 = vmul.f32 -1.442695, %v1871_v33 }
0x26dc   :  { %2782 = vpow2.f32 %v2230_v52 }
0x26dd   :  { %2784 = vpow2.f32 %v2231_v36 }
0x26e4   :  { %v2779_v15 = vpop.eup %2778 }
0x26e5   :  { %1890 = vrot.lane.b32.xlu1 %v2779_v15, %s2797_s22 }
0x26e8   :  { %v2781_v34 = vpop.eup %2780 }
0x26e9   :  { %1892 = vrot.lane.b32.xlu0 %v2781_v34, %s2797_s22  ;;  %v2783_v22 = vpop.eup %2782 }
0x26ea   :  { %v1878_v40 = vadd.f32 1.0, %v2783_v22  ;;  %v2785_v41 = vpop.eup %2784 }
0x26eb   :  { %v1879_v27 = vadd.f32 1.0, %v2785_v41 }
0x26ec   :  { %2786 = vrcp.f32 %v1878_v40 }
0x26ed   :  { %2788 = vrcp.f32 %v1879_v27 }
0x26f9   :  { %v2787_v38 = vpop.eup %2786 }
0x26fa   :  { %v2789_v35 = vpop.eup %2788  ;;  %v1886_v5 = vmul.f32 %v2787_v38, %v1808_v19 }
0x26fb   :  { %v1887_v48 = vmul.f32 %v2789_v35, %v1809_v21  ;;  %v2536_v21 = vld [vmem:[%s3426_s11 + $0x8] sm:$0xff]  }
0x2757   :  { %v1891_v26 = vpop.permute.xlu1 %1890 }
0x2758   :  { %v1896_v42 = vmul.f32 %v2787_v38, %v1891_v26 }
0x275a   :  { %1900 = vrot.lane.b32.xlu1 %v1896_v42, %s2797_s22 }
0x275b   :  { %v1893_v44 = vpop.permute.xlu0 %1892 }
0x275c   :  { %v1897_v45 = vmul.f32 %v2789_v35, %v1893_v44 }
0x275e   :  { %1902 = vrot.lane.b32.xlu0 %v1897_v45, %s2797_s22 }
0x27cc   :  { %v1901_v17 = vpop.permute.xlu1 %1900 }
0x27cd   :  { %v1906_v47 = vadd.f32 %v1901_v17, %v1886_v5 }
0x27cf   :  { %2790 = vtanh.f32 %v1906_v47 }
0x27d0   :  { %v1903_v14 = vpop.permute.xlu0 %1902 }
0x27d1   :  { %v1907_v49 = vadd.f32 %v1903_v14, %v1887_v48 }
0x27d3   :  { %2792 = vtanh.f32 %v1907_v49 }
0x27dc   :  { %v2791_v16 = vpop.eup %2790 }
0x27dd   :  { %1912 = vrot.lane.b32.xlu1 %v2791_v16, %s2797_s22 }
0x27e0   :  { %v2793_v53 = vpop.eup %2792 }
0x27e1   :  { %1914 = vrot.lane.b32.xlu0 %v2793_v53, %s2797_s22 }
0x284f   :  { %v1913_v55 = vpop.permute.xlu1 %1912 }
0x2850   :  { %v1918_v43 = vmul.f32 %v2787_v38, %v1913_v55 }
0x2853   :  { %v1915_v56 = vpop.permute.xlu0 %1914 }
0x2854   :  { %v1919_v46 = vmul.f32 %v2789_v35, %v1915_v56 }
0x2856   :  { %v1920_v57 = vpack.c.bf16 %v1919_v46, %v1918_v43 }
0x2858   :  { %1933 = vrot.lane.b32.xlu1 %v1920_v57, %s2798_s3 }
0x28ca   :  { %v1934_v37 = vpop.permute.xlu1 %1933 }
0x28cb   :  { %2495 = vmatmul.mubr.msk.bf16.vlgmr.msra.gmra.mxu0 %vm219_vm3, %v1934_v37 }
0x28cc   :  { %2514 = vmatprep.mubr.msk.bf16.mxu0 %vm2795_vm1, %v2794_v1  ;;  %2511 = vmatpush3.bf16.msra.mxu0 %v2536_v21 }
0x28cd   :  { %2512 = vmatprep.subr.bf16.mxu0 %v2794_v1 }
0x28d0   :  { %2513 = vmatpush3.bf16.msra.mxu0 %v2537_v11 }
0x298b   :  { %v1984_v62 = vpop.f32.mrf.mxu0 }
0x298c   :  { %v1985_v63 = vadd.f32 %v2232_v39, %v1984_v62 }
0x298d   :  { %v2496_v2 = vpop.f32.mrf.mxu0 }
0x298e   :  { %v1993_v59 = vmul.f32 0.01, %v1985_v63  ;;  %vm1991_vm4 = vcmp.ge.f32.partialorder %v1985_v63, 0.0 }
0x298f   :  { %v1987_v4 = vpop.f32.mrf.mxu0 }
0x2990   :  { %v1988_v6 = vadd.f32 %v2232_v39, %v1987_v4  ;;  %v1995_v19 = vsel %vm1991_vm4, %v1985_v63, %v1993_v59 }
0x2991   :  { %v2497_v9 = vpop.f32.mrf.mxu0 }
0x2992   :  { %vm1992_vm5 = vcmp.ge.f32.partialorder %v1988_v6, 0.0  ;;  %v1994_v7 = vmul.f32 0.01, %v1988_v6 }
0x2994   :  { %v1996_v61 = vsel %vm1992_vm5, %v1988_v6, %v1994_v7 }
0x2995   :  { %v1997_v20 = vpack.c.bf16 %v1996_v61, %v1995_v19 }
0x2997   :  { %2507 = vmatmul.mubr.msk.bf16.vlgmr.msra.gmra.mxu1 %vm2037_vm6, %v1997_v20 }
0x2a57   :  { %v2075_v8 = vpop.f32.mrf.mxu1 }
0x2a58   :  { %v2076_v23 = vadd.f32 %v2236_v10, %v2075_v8 }
0x2a59   :  { %v2508_v24 = vpop.f32.mrf.mxu1 }
0x2a5a   :  { %v2084_v25 = vmul.f32 0.01, %v2076_v23  ;;  %vm2082_vm7 = vcmp.ge.f32.partialorder %v2076_v23, 0.0 }
0x2a5b   :  { %v2078_v0 = vpop.f32.mrf.mxu1 }
0x2a5c   :  { %v2079_v28 = vadd.f32 %v2236_v10, %v2078_v0  ;;  %v2086_v1 = vsel %vm2082_vm7, %v2076_v23, %v2084_v25 }
0x2a5d   :  { %v2509_v18 = vpop.f32.mrf.mxu1 }
0x2a5e   :  { %vm2083_vm8 = vcmp.ge.f32.partialorder %v2079_v28, 0.0  ;;  %v2085_v12 = vmul.f32 0.01, %v2079_v28 }
0x2a60   :  { %v2087_v29 = vsel %vm2083_vm8, %v2079_v28, %v2085_v12 }
0x2a61   :  { %v2088_v30 = vpack.c.bf16 %v2087_v29, %v2086_v1 }
0x2a63   :  { %2515 = vmatmul.mubr.msk.bf16.vlgmr.msra.gmra.mxu0 %vm219_vm3, %v2088_v30 }
0x2b23   :  { %v2149_v32 = vpop.f32.mrf.mxu0 }
0x2b24   :  { %v2150_v33 = vadd.f32 %v2242_v31, %v2149_v32 }
0x2b25   :  { %v2516_v13 = vpop.f32.mrf.mxu0 }
0x2b26   :  { %2156 = vst [vmem:[%s3429_s13] sm:$0xff] %v2150_v33 }
0x2b27   :  { %v2152_v15 = vpop.f32.mrf.mxu0 }
0x2b28   :  { %v2153_v34 = vadd.f32 %v2242_v31, %v2152_v15 }
0x2b29   :  { %v2517_v52 = vpop.f32.mrf.mxu0 }
0x2b2a   :  { %2157 = vst [vmem:[%s3429_s13 + $0x8] sm:$0xff] %v2153_v34 }

</bundles_post_ra>
